<compile_context>
chip_gen: v7x
topology: tpu7x:2x2x1
jax: 0.10.0
libtpu: 0.0.40
codegen_flags: <defaults>
</compile_context>

<pallas_src>
import math

import jax
import jax.numpy as jnp
from jax.experimental import pallas as pl
from jax.experimental.pallas import tpu as pltpu


def _vmem_spec():
    return pl.BlockSpec(memory_space=pltpu.MemorySpace.VMEM)


# ----------------------------------------------------------------------------
# Backbone stand-in kernel: GAP over spatial fused with channel-weighted sum
# ----------------------------------------------------------------------------
def _backbone_kernel(frames_ref, w_ref, b_ref, out_ref):
    # frames_ref: (tile_n, 3*hw) bf16; w_ref: (3, fc2) f32; b_ref: (1, fc2) f32
    tn = frames_ref.shape[0]
    hw = frames_ref.shape[1] // 3
    fc2 = w_ref.shape[1]
    inv_hw = 1.0 / float(hw)
    acc = jnp.broadcast_to(b_ref[...], (tn, fc2))
    # Weighted sum of per-channel spatial means on VPU/XLU (a K=3 MXU matmul
    # would be pure pipeline-fill latency); f32 accumulation of bf16 inputs.
    for c in range(3):
        seg = frames_ref[:, c * hw:(c + 1) * hw].astype(jnp.float32)
        mc = jnp.sum(seg, axis=1, keepdims=True) * inv_hw      # (tile_n, 1)
        acc = acc + mc * w_ref[c:c + 1, :]                      # (tile_n, fc2)
    out_ref[...] = acc


def _backbone_tile_rows(hw, n, in_budget_bytes=16 * 1024 * 1024):
    # Budget the double-buffered bf16 input block; keep headroom for v7x 64MiB.
    bytes_per_row = 3 * hw * 2
    max_rows = max(8, ((in_budget_bytes // (2 * bytes_per_row)) // 8) * 8)
    n_up = ((n + 7) // 8) * 8
    return max(8, min(512, max_rows, n_up))


def backbone_forward(frames, w, b):
    # frames: (n_pad, 3*HW) bf16 with n_pad a multiple of tile_n.
    n_pad, chw = frames.shape
    fc2 = w.shape[1]
    tile_n = _backbone_tile_rows(chw // 3, n_pad)
    assert n_pad % tile_n == 0
    grid = (n_pad // tile_n,)
    return pl.pallas_call(
        _backbone_kernel,
        out_shape=jax.ShapeDtypeStruct((n_pad, fc2), jnp.float32),
        grid_spec=pltpu.PrefetchScalarGridSpec(
            num_scalar_prefetch=0,
            grid=grid,
            in_specs=[
                pl.BlockSpec((tile_n, chw), lambda i: (i, 0)),
                pl.BlockSpec((3, fc2), lambda i: (0, 0)),
                pl.BlockSpec((1, fc2), lambda i: (0, 0)),
            ],
            out_specs=pl.BlockSpec((tile_n, fc2), lambda i: (i, 0)),
        ),
        compiler_params=pltpu.CompilerParams(
            dimension_semantics=("parallel",),
            vmem_limit_bytes=40 * 1024 * 1024,
        ),
    )(frames, w, b.reshape(1, -1))


# ----------------------------------------------------------------------------
# Fused sequence kernel: 2-layer bidirectional LSTM + linear head
# (PyTorch gate order i, f, g, o; combined bias b_ih + b_hh)
# ----------------------------------------------------------------------------
def _make_sequence_kernel(T, Bp, H, tgt):
    def kernel(feats_ref,                                   # (T*Bp, D)   bf16
               w_ih1_ref, w_hh1_ref, b1_ref,                # (D,8H) (H,8H) (1,8H)
               w_ih2f_ref, w_ih2b_ref, b2f_ref, b2b_ref,    # (2H,4H) x2, (1,4H) x2
               w_hh2_ref,                                   # (H,8H)
               w_head_ref, b_head_ref,                      # (2H,4), (1,4)
               ang_ref, var_ref,                            # (Bp,3) f32 outputs
               out1_s):                                     # scratch (T*Bp, 2H) bf16
        f32 = jnp.float32
        bf16 = jnp.bfloat16

        def mm(a, w):
            return jnp.dot(a, w, preferred_element_type=f32)

        def cell(gates, c_prev):
            # gates: (rows, 4H) f32 — PyTorch order i, f, g, o.
            i_g = jax.nn.sigmoid(gates[:, 0:H])
            f_g = jax.nn.sigmoid(gates[:, H:2 * H])
            g_g = jnp.tanh(gates[:, 2 * H:3 * H])
            o_g = jax.nn.sigmoid(gates[:, 3 * H:4 * H])
            c_new = f_g * c_prev + i_g * g_g
            h_new = o_g * jnp.tanh(c_new)
            return h_new, c_new

        # Hoist all weight / bias loads out of the recurrences (bf16 weights).
        w_ih1 = w_ih1_ref[...]
        w_hh1 = w_hh1_ref[...]
        b1 = b1_ref[...]
        w_ih2f = w_ih2f_ref[...]
        w_ih2b = w_ih2b_ref[...]
        b2f = b2f_ref[...]
        b2b = b2b_ref[...]
        w_hh2 = w_hh2_ref[...]
        w_head = w_head_ref[...]
        b_head = b_head_ref[...]

        x = feats_ref[...]  # (T*Bp, D) bf16, time-major rows (t*Bp + b)

        # ---- Layer 1: one hoisted input projection for BOTH directions ----
        gx1 = mm(x, w_ih1) + b1            # (T*Bp, 8H) f32; [:,:4H]=fwd, [:,4H:]=bwd

        # ---- Layer 1 recurrence: fwd & bwd fused per step, fully unrolled ----
        h12 = jnp.zeros((2 * Bp, H), bf16)     # rows 0:Bp fwd, Bp:2Bp bwd
        c12 = jnp.zeros((2 * Bp, H), f32)
        for t in range(T):
            tb = T - 1 - t
            rec = mm(h12, w_hh1)                                   # (2Bp, 8H)
            g_f = gx1[t * Bp:(t + 1) * Bp, 0:4 * H] + rec[0:Bp, 0:4 * H]
            g_b = gx1[tb * Bp:(tb + 1) * Bp, 4 * H:8 * H] + rec[Bp:2 * Bp, 4 * H:8 * H]
            h_new, c12 = cell(jnp.concatenate([g_f, g_b], axis=0), c12)
            h12 = h_new.astype(bf16)                                # single cast/step
            out1_s[t * Bp:(t + 1) * Bp, 0:H] = h12[0:Bp, :]         # fwd h at t
            out1_s[tb * Bp:(tb + 1) * Bp, H:2 * H] = h12[Bp:2 * Bp, :]  # bwd h at tb

        # ---- Layer 2: project only the rows the recurrence will consume ----
        x2 = out1_s[...]                        # (T*Bp, 2H) bf16, [fwd | bwd]
        nf = tgt + 1                            # fwd needs t = 0..tgt
        nb = T - tgt                            # bwd needs t = T-1..tgt
        gx2f = mm(x2[0:nf * Bp, :], w_ih2f) + b2f          # (nf*Bp, 4H)
        gx2b = mm(x2[tgt * Bp:T * Bp, :], w_ih2b) + b2b    # (nb*Bp, 4H)

        # ---- Layer 2 recurrence: fused fwd/bwd steps, early termination ----
        steps_f = list(range(nf))                     # 0 .. tgt
        steps_b = list(range(T - 1, tgt - 1, -1))     # T-1 .. tgt
        hf = jnp.zeros((Bp, H), bf16)
        hb = jnp.zeros((Bp, H), bf16)
        cf = jnp.zeros((Bp, H), f32)
        cb = jnp.zeros((Bp, H), f32)
        n_common = min(nf, nb)
        for s in range(n_common):
            t_f = steps_f[s]
            t_b = steps_b[s]
            rec = mm(jnp.concatenate([hf, hb], axis=0), w_hh2)     # (2Bp, 8H)
            g_f = gx2f[t_f * Bp:(t_f + 1) * Bp, :] + rec[0:Bp, 0:4 * H]
            g_b = gx2b[(t_b - tgt) * Bp:(t_b - tgt + 1) * Bp, :] + rec[Bp:2 * Bp, 4 * H:8 * H]
            h_new, c_new = cell(jnp.concatenate([g_f, g_b], axis=0),
                                jnp.concatenate([cf, cb], axis=0))
            h_new = h_new.astype(bf16)
            hf, hb = h_new[0:Bp, :], h_new[Bp:2 * Bp, :]
            cf, cb = c_new[0:Bp, :], c_new[Bp:2 * Bp, :]
        for s in range(n_common, nf):                 # fwd-only leftovers
            t_f = steps_f[s]
            g = gx2f[t_f * Bp:(t_f + 1) * Bp, :] + mm(hf, w_hh2[:, 0:4 * H])
            h_new, cf = cell(g, cf)
            hf = h_new.astype(bf16)
        for s in range(n_common, nb):                 # bwd-only leftovers
            t_b = steps_b[s]
            g = gx2b[(t_b - tgt) * Bp:(t_b - tgt + 1) * Bp, :] + mm(hb, w_hh2[:, 4 * H:8 * H])
            h_new, cb = cell(g, cb)
            hb = h_new.astype(bf16)

        # ---- Head: Linear(2H -> 4), tanh on first 3, pi*sigmoid on last ----
        h_cat = jnp.concatenate([hf, hb], axis=1)               # (Bp, 2H) bf16
        out = mm(h_cat, w_head) + b_head                        # (Bp, 4) f32
        ang_ref[...] = jnp.tanh(out[:, 0:3])
        var = math.pi * jax.nn.sigmoid(out[:, 3:4])
        var_ref[...] = jnp.broadcast_to(var, (Bp, 3))

    return kernel


def sequence_forward(feats_tm, params, T, Bp, D, tgt):
    H = D  # hidden size == img_feature_dim
    bf16 = jnp.bfloat16

    def wc(w):
        return w.astype(bf16)

    l1, l2 = params["lstm"]
    # Fuse fwd/bwd weights along the output (N) dim so the recurrent and
    # layer-1 input projections are one MXU call each.
    w_ih1 = jnp.concatenate([l1["fwd"]["w_ih_t"], l1["bwd"]["w_ih_t"]], axis=1)  # (D, 8H)
    w_hh1 = jnp.concatenate([l1["fwd"]["w_hh_t"], l1["bwd"]["w_hh_t"]], axis=1)  # (H, 8H)
    b1 = jnp.concatenate([l1["fwd"]["b"], l1["bwd"]["b"]]).reshape(1, -1)        # (1, 8H)
    w_hh2 = jnp.concatenate([l2["fwd"]["w_hh_t"], l2["bwd"]["w_hh_t"]], axis=1)  # (H, 8H)

    args = [
        feats_tm,
        wc(w_ih1), wc(w_hh1), b1,
        wc(l2["fwd"]["w_ih_t"]), wc(l2["bwd"]["w_ih_t"]),
        l2["fwd"]["b"].reshape(1, -1), l2["bwd"]["b"].reshape(1, -1),
        wc(w_hh2),
        wc(params["w_head_t"]), params["b_head"].reshape(1, -1),
    ]
    kernel = _make_sequence_kernel(T, Bp, H, tgt)
    return pl.pallas_call(
        kernel,
        out_shape=(
            jax.ShapeDtypeStruct((Bp, 3), jnp.float32),
            jax.ShapeDtypeStruct((Bp, 3), jnp.float32),
        ),
        in_specs=[_vmem_spec()] * len(args),
        out_specs=(_vmem_spec(), _vmem_spec()),
        scratch_shapes=[
            pltpu.VMEM((T * Bp, 2 * H), jnp.bfloat16),   # shared fwd|bwd layer-1 h
        ],
        compiler_params=pltpu.CompilerParams(vmem_limit_bytes=32 * 1024 * 1024),
    )(*args)


# ----------------------------------------------------------------------------
# Full forward
# ----------------------------------------------------------------------------
def gaze_sincos_lstm_forward(x, params, seq_len, target_seq_index=None):
    if target_seq_index is None:
        target_seq_index = seq_len // 2
    batch = x.shape[0]
    h_img, w_img = x.shape[-2], x.shape[-1]
    hw = h_img * w_img
    n = batch * seq_len

    # (B, seq_len*3, H, W) -> (B*seq_len, 3*H*W) dense 2D bf16 layout
    # (same row content as input.view(-1, 3, H, W)); bf16 halves HBM traffic.
    frames = x.reshape(n, 3 * hw).astype(jnp.bfloat16)
    tile_n = _backbone_tile_rows(hw, n)
    n_pad = ((n + tile_n - 1) // tile_n) * tile_n
    if n_pad != n:
        frames = jnp.pad(frames, ((0, n_pad - n), (0, 0)))

    feats = backbone_forward(frames, params["w_bb"], params["b_bb"])[:n]  # (B*T, fc2) f32
    fc2 = feats.shape[-1]

    # Pad batch to the 8-sublane tile (unmasked stores / fuller MXU rows),
    # time-major flatten, cast once to bf16 (tiny, done in XLA).
    b_pad = max(8, ((batch + 7) // 8) * 8)
    feats = feats.reshape(batch, seq_len, fc2)
    if b_pad != batch:
        feats = jnp.pad(feats, ((0, b_pad - batch), (0, 0), (0, 0)))
    feats_tm = jnp.transpose(feats, (1, 0, 2)).reshape(seq_len * b_pad, fc2)
    feats_tm = feats_tm.astype(jnp.bfloat16)

    angular, var = sequence_forward(
        feats_tm, params, seq_len, b_pad, fc2, target_seq_index
    )
    return angular[:batch], var[:batch]


# ----------------------------------------------------------------------------
# Deterministic parameter init (PyTorch-style uniform(-k, k), k = 1/sqrt(H))
# ----------------------------------------------------------------------------
def init_params(key, fc2):
    keys = iter(jax.random.split(key, 64))
    k = 1.0 / math.sqrt(fc2)

    def u(shape):
        return jax.random.uniform(next(keys), shape, jnp.float32, -k, k)

    params = {
        "w_bb": u((3, fc2)),
        "b_bb": u((fc2,)),
        "lstm": [],
        "w_head_t": None,
        "b_head": None,
    }

    for layer in range(2):
        d_in = fc2 if layer == 0 else 2 * fc2
        layer_p = {}
        for direction in ("fwd", "bwd"):
            w_ih = u((4 * fc2, d_in))
            w_hh = u((4 * fc2, fc2))
            b_ih = u((4 * fc2,))
            b_hh = u((4 * fc2,))
            layer_p[direction] = {
                "w_ih_t": jnp.transpose(w_ih),  # (D, 4H)
                "w_hh_t": jnp.transpose(w_hh),  # (H, 4H)
                "b": b_ih + b_hh,               # (4H,)
            }
        params["lstm"].append(layer_p)

    k_head = 1.0 / math.sqrt(2 * fc2)
    w_head = jax.random.uniform(next(keys), (4, 2 * fc2), jnp.float32, -k_head, k_head)
    b_head = jax.random.uniform(next(keys), (4,), jnp.float32, -k_head, k_head)
    params["w_head_t"] = jnp.transpose(w_head)  # (2H, 4)
    params["b_head"] = b_head
    return params


if __name__ == "__main__":
    FC2 = 32          # img_feature_dim (small for the synthetic test; real model uses 256)
    SEQ_LEN = 7       # default from the module
    B, H_IMG, W_IMG = 2, 16, 16

    root = jax.random.PRNGKey(0)
    k_x, k_p = jax.random.split(root)
    x = jax.random.normal(k_x, (B, SEQ_LEN * 3, H_IMG, W_IMG), jnp.float32)
    params = init_params(k_p, FC2)

    fwd = jax.jit(lambda xx: gaze_sincos_lstm_forward(xx, params, SEQ_LEN))
    angular, var = fwd(x)
    jax.block_until_ready((angular, var))

    assert angular.shape == (B, 3) and var.shape == (B, 3)
    assert bool(jnp.all(jnp.isfinite(angular))) and bool(jnp.all(jnp.isfinite(var)))
    print("KERNEL_OK")
</pallas_src>

<mosaic_0001>
module attributes {stable_mosaic.version = 11 : i64} {
  func.func @_backbone_kernel(%arg0: i32, %arg1: memref<16x768xbf16, #tpu.memory_space<vmem>>, %arg2: memref<3x32xf32, #tpu.memory_space<vmem>>, %arg3: memref<1x32xf32, #tpu.memory_space<vmem>>, %arg4: memref<16x32xf32, #tpu.memory_space<vmem>>) attributes {dimension_semantics = [#tpu.dimension_semantics<parallel>], iteration_bounds = array<i64: 1>, scalar_prefetch = 0 : i64, scratch_operands = 0 : i64, tpu.core_type = #tpu.core_type<tc>, window_params = [{transform_indices = @transform_0, window_bounds = array<i64: 16, 768>}, {pipeline_mode = #tpu.pipeline_mode<synchronous>, transform_indices = @transform_1, window_bounds = array<i64: 3, 32>}, {pipeline_mode = #tpu.pipeline_mode<synchronous>, transform_indices = @transform_2, window_bounds = array<i64: 1, 32>}, {transform_indices = @transform_3, window_bounds = array<i64: 16, 32>}]} {
    %c0 = arith.constant 0 : index
    %c0_0 = arith.constant 0 : index
    %0 = vector.load %arg3[%c0, %c0_0] : memref<1x32xf32, #tpu.memory_space<vmem>>, vector<1x32xf32>
    %1 = vector.shape_cast %0 : vector<1x32xf32> to vector<1x32xf32>
    %2 = vector.broadcast %1 : vector<1x32xf32> to vector<16x32xf32>
    %c0_1 = arith.constant 0 : index
    %c0_2 = arith.constant 0 : index
    %3 = vector.load %arg1[%c0_1, %c0_2] : memref<16x768xbf16, #tpu.memory_space<vmem>>, vector<16x256xbf16>
    %4 = arith.extf %3 : vector<16x256xbf16> to vector<16x256xf32>
    %cst = arith.constant dense<0.000000e+00> : vector<16xf32>
    %5 = vector.multi_reduction <add>, %4, %cst [1] : vector<16x256xf32> to vector<16xf32>
    %6 = vector.shape_cast %5 : vector<16xf32> to vector<16x1xf32>
    %cst_3 = arith.constant 3.906250e-03 : f32
    %7 = vector.broadcast %cst_3 : f32 to vector<16x1xf32>
    %8 = arith.mulf %6, %7 : vector<16x1xf32>
    %c0_4 = arith.constant 0 : index
    %c0_5 = arith.constant 0 : index
    %9 = vector.load %arg2[%c0_4, %c0_5] : memref<3x32xf32, #tpu.memory_space<vmem>>, vector<1x32xf32>
    %10 = vector.broadcast %8 : vector<16x1xf32> to vector<16x32xf32>
    %11 = vector.broadcast %9 : vector<1x32xf32> to vector<16x32xf32>
    %12 = arith.mulf %10, %11 : vector<16x32xf32>
    %13 = arith.addf %2, %12 : vector<16x32xf32>
    %c0_6 = arith.constant 0 : index
    %c256 = arith.constant 256 : index
    %14 = vector.load %arg1[%c0_6, %c256] : memref<16x768xbf16, #tpu.memory_space<vmem>>, vector<16x256xbf16>
    %15 = arith.extf %14 : vector<16x256xbf16> to vector<16x256xf32>
    %cst_7 = arith.constant dense<0.000000e+00> : vector<16xf32>
    %16 = vector.multi_reduction <add>, %15, %cst_7 [1] : vector<16x256xf32> to vector<16xf32>
    %17 = vector.shape_cast %16 : vector<16xf32> to vector<16x1xf32>
    %cst_8 = arith.constant 3.906250e-03 : f32
    %18 = vector.broadcast %cst_8 : f32 to vector<16x1xf32>
    %19 = arith.mulf %17, %18 : vector<16x1xf32>
    %c1 = arith.constant 1 : index
    %c0_9 = arith.constant 0 : index
    %20 = vector.load %arg2[%c1, %c0_9] : memref<3x32xf32, #tpu.memory_space<vmem>>, vector<1x32xf32>
    %21 = vector.broadcast %19 : vector<16x1xf32> to vector<16x32xf32>
    %22 = vector.broadcast %20 : vector<1x32xf32> to vector<16x32xf32>
    %23 = arith.mulf %21, %22 : vector<16x32xf32>
    %24 = arith.addf %13, %23 : vector<16x32xf32>
    %c0_10 = arith.constant 0 : index
    %c512 = arith.constant 512 : index
    %25 = vector.load %arg1[%c0_10, %c512] : memref<16x768xbf16, #tpu.memory_space<vmem>>, vector<16x256xbf16>
    %26 = arith.extf %25 : vector<16x256xbf16> to vector<16x256xf32>
    %cst_11 = arith.constant dense<0.000000e+00> : vector<16xf32>
    %27 = vector.multi_reduction <add>, %26, %cst_11 [1] : vector<16x256xf32> to vector<16xf32>
    %28 = vector.shape_cast %27 : vector<16xf32> to vector<16x1xf32>
    %cst_12 = arith.constant 3.906250e-03 : f32
    %29 = vector.broadcast %cst_12 : f32 to vector<16x1xf32>
    %30 = arith.mulf %28, %29 : vector<16x1xf32>
    %c2 = arith.constant 2 : index
    %c0_13 = arith.constant 0 : index
    %31 = vector.load %arg2[%c2, %c0_13] : memref<3x32xf32, #tpu.memory_space<vmem>>, vector<1x32xf32>
    %32 = vector.broadcast %30 : vector<16x1xf32> to vector<16x32xf32>
    %33 = vector.broadcast %31 : vector<1x32xf32> to vector<16x32xf32>
    %34 = arith.mulf %32, %33 : vector<16x32xf32>
    %35 = arith.addf %24, %34 : vector<16x32xf32>
    %c0_14 = arith.constant 0 : index
    %c0_15 = arith.constant 0 : index
    %36 = vector.load %arg4[%c0_14, %c0_15] : memref<16x32xf32, #tpu.memory_space<vmem>>, vector<16x32xf32>
    tpu.vector_store %arg4[%c0_14, %c0_15], %35 {strides = array<i32>} : memref<16x32xf32, #tpu.memory_space<vmem>>, vector<16x32xf32>,
    return
  }
  func.func @transform_0(%arg0: i32) -> (i32, i32) {
    %c0_i32 = arith.constant 0 : i32
    %c0_i32_0 = arith.constant 0 : i32
    return %arg0, %c0_i32 : i32, i32
  }
  func.func @transform_1(%arg0: i32) -> (i32, i32) {
    %c0_i32 = arith.constant 0 : i32
    %c0_i32_0 = arith.constant 0 : i32
    %c0_i32_1 = arith.constant 0 : i32
    return %c0_i32, %c0_i32_0 : i32, i32
  }
  func.func @transform_2(%arg0: i32) -> (i32, i32) {
    %c0_i32 = arith.constant 0 : i32
    %c0_i32_0 = arith.constant 0 : i32
    %c0_i32_1 = arith.constant 0 : i32
    return %c0_i32, %c0_i32_0 : i32, i32
  }
  func.func @transform_3(%arg0: i32) -> (i32, i32) {
    %c0_i32 = arith.constant 0 : i32
    %c0_i32_0 = arith.constant 0 : i32
    return %arg0, %c0_i32 : i32, i32
  }
}

module attributes {stable_mosaic.version = 11 : i64} {
  func.func @kernel(%arg0: memref<56x32xbf16, #tpu.memory_space<vmem>>, %arg1: memref<32x256xbf16, #tpu.memory_space<vmem>>, %arg2: memref<32x256xbf16, #tpu.memory_space<vmem>>, %arg3: memref<1x256xf32, #tpu.memory_space<vmem>>, %arg4: memref<64x128xbf16, #tpu.memory_space<vmem>>, %arg5: memref<64x128xbf16, #tpu.memory_space<vmem>>, %arg6: memref<1x128xf32, #tpu.memory_space<vmem>>, %arg7: memref<1x128xf32, #tpu.memory_space<vmem>>, %arg8: memref<32x256xbf16, #tpu.memory_space<vmem>>, %arg9: memref<64x4xbf16, #tpu.memory_space<vmem>>, %arg10: memref<1x4xf32, #tpu.memory_space<vmem>>, %arg11: memref<8x3xf32, #tpu.memory_space<vmem>>, %arg12: memref<8x3xf32, #tpu.memory_space<vmem>>, %arg13: memref<56x64xbf16, #tpu.memory_space<vmem>>) attributes {dimension_semantics = [], scalar_prefetch = 0 : i64, scratch_operands = 1 : i64, tpu.core_type = #tpu.core_type<tc>} {
    %c0 = arith.constant 0 : index
    %c0_0 = arith.constant 0 : index
    %0 = vector.load %arg1[%c0, %c0_0] : memref<32x256xbf16, #tpu.memory_space<vmem>>, vector<32x256xbf16>
    %c0_1 = arith.constant 0 : index
    %c0_2 = arith.constant 0 : index
    %1 = vector.load %arg2[%c0_1, %c0_2] : memref<32x256xbf16, #tpu.memory_space<vmem>>, vector<32x256xbf16>
    %c0_3 = arith.constant 0 : index
    %c0_4 = arith.constant 0 : index
    %2 = vector.load %arg3[%c0_3, %c0_4] : memref<1x256xf32, #tpu.memory_space<vmem>>, vector<1x256xf32>
    %c0_5 = arith.constant 0 : index
    %c0_6 = arith.constant 0 : index
    %3 = vector.load %arg4[%c0_5, %c0_6] : memref<64x128xbf16, #tpu.memory_space<vmem>>, vector<64x128xbf16>
    %c0_7 = arith.constant 0 : index
    %c0_8 = arith.constant 0 : index
    %4 = vector.load %arg5[%c0_7, %c0_8] : memref<64x128xbf16, #tpu.memory_space<vmem>>, vector<64x128xbf16>
    %c0_9 = arith.constant 0 : index
    %c0_10 = arith.constant 0 : index
    %5 = vector.load %arg6[%c0_9, %c0_10] : memref<1x128xf32, #tpu.memory_space<vmem>>, vector<1x128xf32>
    %c0_11 = arith.constant 0 : index
    %c0_12 = arith.constant 0 : index
    %6 = vector.load %arg7[%c0_11, %c0_12] : memref<1x128xf32, #tpu.memory_space<vmem>>, vector<1x128xf32>
    %c0_13 = arith.constant 0 : index
    %c0_14 = arith.constant 0 : index
    %7 = vector.load %arg8[%c0_13, %c0_14] : memref<32x256xbf16, #tpu.memory_space<vmem>>, vector<32x256xbf16>
    %c0_15 = arith.constant 0 : index
    %c0_16 = arith.constant 0 : index
    %8 = vector.load %arg9[%c0_15, %c0_16] : memref<64x4xbf16, #tpu.memory_space<vmem>>, vector<64x4xbf16>
    %c0_17 = arith.constant 0 : index
    %c0_18 = arith.constant 0 : index
    %9 = vector.load %arg10[%c0_17, %c0_18] : memref<1x4xf32, #tpu.memory_space<vmem>>, vector<1x4xf32>
    %c0_19 = arith.constant 0 : index
    %c0_20 = arith.constant 0 : index
    %10 = vector.load %arg0[%c0_19, %c0_20] : memref<56x32xbf16, #tpu.memory_space<vmem>>, vector<56x32xbf16>
    %cst = arith.constant dense<0.000000e+00> : vector<56x256xf32>
    %11 = tpu.matmul %10, %0, %cst {dimension_numbers = #tpu.dot_dimension_numbers<[1], [0], [0], [1], [0, 0, 1, 1], [], []>} : vector<56x32xbf16>, vector<32x256xbf16>, vector<56x256xf32> -> vector<56x256xf32>
    %12 = vector.broadcast %2 : vector<1x256xf32> to vector<56x256xf32>
    %13 = arith.addf %11, %12 : vector<56x256xf32>
    %cst_21 = arith.constant 0.000000e+00 : bf16
    %14 = vector.broadcast %cst_21 : bf16 to vector<16x32xbf16>
    %cst_22 = arith.constant 0.000000e+00 : f32
    %15 = vector.broadcast %cst_22 : f32 to vector<16x32xf32>
    %cst_23 = arith.constant dense<0.000000e+00> : vector<16x256xf32>
    %16 = tpu.matmul %14, %1, %cst_23 {dimension_numbers = #tpu.dot_dimension_numbers<[1], [0], [0], [1], [0, 0, 1, 1], [], []>} : vector<16x32xbf16>, vector<32x256xbf16>, vector<16x256xf32> -> vector<16x256xf32>
    %17 = vector.extract_strided_slice %13 {offsets = [0, 0], sizes = [8, 128], strides = [1, 1]} : vector<56x256xf32> to vector<8x128xf32>
    %18 = vector.extract_strided_slice %16 {offsets = [0, 0], sizes = [8, 128], strides = [1, 1]} : vector<16x256xf32> to vector<8x128xf32>
    %19 = arith.addf %17, %18 : vector<8x128xf32>
    %20 = vector.extract_strided_slice %13 {offsets = [48, 128], sizes = [8, 128], strides = [1, 1]} : vector<56x256xf32> to vector<8x128xf32>
    %21 = vector.extract_strided_slice %16 {offsets = [8, 128], sizes = [8, 128], strides = [1, 1]} : vector<16x256xf32> to vector<8x128xf32>
    %22 = arith.addf %20, %21 : vector<8x128xf32>
    %23 = tpu.concatenate %19, %22 in 0 : vector<8x128xf32>, vector<8x128xf32> -> vector<16x128xf32>
    %24 = vector.extract_strided_slice %23 {offsets = [0, 0], sizes = [16, 32], strides = [1, 1]} : vector<16x128xf32> to vector<16x32xf32>
    %25 = arith.negf %24 : vector<16x32xf32>
    %26 = math.exp %25 : vector<16x32xf32>
    %cst_24 = arith.constant 1.000000e+00 : f32
    %27 = vector.broadcast %cst_24 : f32 to vector<16x32xf32>
    %28 = arith.addf %27, %26 : vector<16x32xf32>
    %29 = arith.divf %27, %28 : vector<16x32xf32>
    %30 = vector.extract_strided_slice %23 {offsets = [0, 32], sizes = [16, 32], strides = [1, 1]} : vector<16x128xf32> to vector<16x32xf32>
    %31 = arith.negf %30 : vector<16x32xf32>
    %32 = math.exp %31 : vector<16x32xf32>
    %cst_25 = arith.constant 1.000000e+00 : f32
    %33 = vector.broadcast %cst_25 : f32 to vector<16x32xf32>
    %34 = arith.addf %33, %32 : vector<16x32xf32>
    %35 = arith.divf %33, %34 : vector<16x32xf32>
    %36 = vector.extract_strided_slice %23 {offsets = [0, 64], sizes = [16, 32], strides = [1, 1]} : vector<16x128xf32> to vector<16x32xf32>
    %37 = math.tanh %36 : vector<16x32xf32>
    %38 = vector.extract_strided_slice %23 {offsets = [0, 96], sizes = [16, 32], strides = [1, 1]} : vector<16x128xf32> to vector<16x32xf32>
    %39 = arith.negf %38 : vector<16x32xf32>
    %40 = math.exp %39 : vector<16x32xf32>
    %cst_26 = arith.constant 1.000000e+00 : f32
    %41 = vector.broadcast %cst_26 : f32 to vector<16x32xf32>
    %42 = arith.addf %41, %40 : vector<16x32xf32>
    %43 = arith.divf %41, %42 : vector<16x32xf32>
    %44 = arith.mulf %35, %15 : vector<16x32xf32>
    %45 = arith.mulf %29, %37 : vector<16x32xf32>
    %46 = arith.addf %44, %45 : vector<16x32xf32>
    %47 = math.tanh %46 : vector<16x32xf32>
    %48 = arith.mulf %43, %47 : vector<16x32xf32>
    %49 = arith.truncf %48 : vector<16x32xf32> to vector<16x32xbf16>
    %50 = vector.extract_strided_slice %49 {offsets = [0, 0], sizes = [8, 32], strides = [1, 1]} : vector<16x32xbf16> to vector<8x32xbf16>
    %c0_27 = arith.constant 0 : index
    %c0_28 = arith.constant 0 : index
    %51 = vector.load %arg13[%c0_27, %c0_28] : memref<56x64xbf16, #tpu.memory_space<vmem>>, vector<8x32xbf16>
    tpu.vector_store %arg13[%c0_27, %c0_28], %50 {strides = array<i32>} : memref<56x64xbf16, #tpu.memory_space<vmem>>, vector<8x32xbf16>,
    %52 = vector.extract_strided_slice %49 {offsets = [8, 0], sizes = [8, 32], strides = [1, 1]} : vector<16x32xbf16> to vector<8x32xbf16>
    %c48 = arith.constant 48 : index
    %c32 = arith.constant 32 : index
    %53 = vector.load %arg13[%c48, %c32] : memref<56x64xbf16, #tpu.memory_space<vmem>>, vector<8x32xbf16>
    tpu.vector_store %arg13[%c48, %c32], %52 {strides = array<i32>} : memref<56x64xbf16, #tpu.memory_space<vmem>>, vector<8x32xbf16>,
    %cst_29 = arith.constant dense<0.000000e+00> : vector<16x256xf32>
    %54 = tpu.matmul %49, %1, %cst_29 {dimension_numbers = #tpu.dot_dimension_numbers<[1], [0], [0], [1], [0, 0, 1, 1], [], []>} : vector<16x32xbf16>, vector<32x256xbf16>, vector<16x256xf32> -> vector<16x256xf32>
    %55 = vector.extract_strided_slice %13 {offsets = [8, 0], sizes = [8, 128], strides = [1, 1]} : vector<56x256xf32> to vector<8x128xf32>
    %56 = vector.extract_strided_slice %54 {offsets = [0, 0], sizes = [8, 128], strides = [1, 1]} : vector<16x256xf32> to vector<8x128xf32>
    %57 = arith.addf %55, %56 : vector<8x128xf32>
    %58 = vector.extract_strided_slice %13 {offsets = [40, 128], sizes = [8, 128], strides = [1, 1]} : vector<56x256xf32> to vector<8x128xf32>
    %59 = vector.extract_strided_slice %54 {offsets = [8, 128], sizes = [8, 128], strides = [1, 1]} : vector<16x256xf32> to vector<8x128xf32>
    %60 = arith.addf %58, %59 : vector<8x128xf32>
    %61 = tpu.concatenate %57, %60 in 0 : vector<8x128xf32>, vector<8x128xf32> -> vector<16x128xf32>
    %62 = vector.extract_strided_slice %61 {offsets = [0, 0], sizes = [16, 32], strides = [1, 1]} : vector<16x128xf32> to vector<16x32xf32>
    %63 = arith.negf %62 : vector<16x32xf32>
    %64 = math.exp %63 : vector<16x32xf32>
    %cst_30 = arith.constant 1.000000e+00 : f32
    %65 = vector.broadcast %cst_30 : f32 to vector<16x32xf32>
    %66 = arith.addf %65, %64 : vector<16x32xf32>
    %67 = arith.divf %65, %66 : vector<16x32xf32>
    %68 = vector.extract_strided_slice %61 {offsets = [0, 32], sizes = [16, 32], strides = [1, 1]} : vector<16x128xf32> to vector<16x32xf32>
    %69 = arith.negf %68 : vector<16x32xf32>
    %70 = math.exp %69 : vector<16x32xf32>
    %cst_31 = arith.constant 1.000000e+00 : f32
    %71 = vector.broadcast %cst_31 : f32 to vector<16x32xf32>
    %72 = arith.addf %71, %70 : vector<16x32xf32>
    %73 = arith.divf %71, %72 : vector<16x32xf32>
    %74 = vector.extract_strided_slice %61 {offsets = [0, 64], sizes = [16, 32], strides = [1, 1]} : vector<16x128xf32> to vector<16x32xf32>
    %75 = math.tanh %74 : vector<16x32xf32>
    %76 = vector.extract_strided_slice %61 {offsets = [0, 96], sizes = [16, 32], strides = [1, 1]} : vector<16x128xf32> to vector<16x32xf32>
    %77 = arith.negf %76 : vector<16x32xf32>
    %78 = math.exp %77 : vector<16x32xf32>
    %cst_32 = arith.constant 1.000000e+00 : f32
    %79 = vector.broadcast %cst_32 : f32 to vector<16x32xf32>
    %80 = arith.addf %79, %78 : vector<16x32xf32>
    %81 = arith.divf %79, %80 : vector<16x32xf32>
    %82 = arith.mulf %73, %46 : vector<16x32xf32>
    %83 = arith.mulf %67, %75 : vector<16x32xf32>
    %84 = arith.addf %82, %83 : vector<16x32xf32>
    %85 = math.tanh %84 : vector<16x32xf32>
    %86 = arith.mulf %81, %85 : vector<16x32xf32>
    %87 = arith.truncf %86 : vector<16x32xf32> to vector<16x32xbf16>
    %88 = vector.extract_strided_slice %87 {offsets = [0, 0], sizes = [8, 32], strides = [1, 1]} : vector<16x32xbf16> to vector<8x32xbf16>
    %c8 = arith.constant 8 : index
    %c0_33 = arith.constant 0 : index
    %89 = vector.load %arg13[%c8, %c0_33] : memref<56x64xbf16, #tpu.memory_space<vmem>>, vector<8x32xbf16>
    tpu.vector_store %arg13[%c8, %c0_33], %88 {strides = array<i32>} : memref<56x64xbf16, #tpu.memory_space<vmem>>, vector<8x32xbf16>,
    %90 = vector.extract_strided_slice %87 {offsets = [8, 0], sizes = [8, 32], strides = [1, 1]} : vector<16x32xbf16> to vector<8x32xbf16>
    %c40 = arith.constant 40 : index
    %c32_34 = arith.constant 32 : index
    %91 = vector.load %arg13[%c40, %c32_34] : memref<56x64xbf16, #tpu.memory_space<vmem>>, vector<8x32xbf16>
    tpu.vector_store %arg13[%c40, %c32_34], %90 {strides = array<i32>} : memref<56x64xbf16, #tpu.memory_space<vmem>>, vector<8x32xbf16>,
    %cst_35 = arith.constant dense<0.000000e+00> : vector<16x256xf32>
    %92 = tpu.matmul %87, %1, %cst_35 {dimension_numbers = #tpu.dot_dimension_numbers<[1], [0], [0], [1], [0, 0, 1, 1], [], []>} : vector<16x32xbf16>, vector<32x256xbf16>, vector<16x256xf32> -> vector<16x256xf32>
    %93 = vector.extract_strided_slice %13 {offsets = [16, 0], sizes = [8, 128], strides = [1, 1]} : vector<56x256xf32> to vector<8x128xf32>
    %94 = vector.extract_strided_slice %92 {offsets = [0, 0], sizes = [8, 128], strides = [1, 1]} : vector<16x256xf32> to vector<8x128xf32>
    %95 = arith.addf %93, %94 : vector<8x128xf32>
    %96 = vector.extract_strided_slice %13 {offsets = [32, 128], sizes = [8, 128], strides = [1, 1]} : vector<56x256xf32> to vector<8x128xf32>
    %97 = vector.extract_strided_slice %92 {offsets = [8, 128], sizes = [8, 128], strides = [1, 1]} : vector<16x256xf32> to vector<8x128xf32>
    %98 = arith.addf %96, %97 : vector<8x128xf32>
    %99 = tpu.concatenate %95, %98 in 0 : vector<8x128xf32>, vector<8x128xf32> -> vector<16x128xf32>
    %100 = vector.extract_strided_slice %99 {offsets = [0, 0], sizes = [16, 32], strides = [1, 1]} : vector<16x128xf32> to vector<16x32xf32>
    %101 = arith.negf %100 : vector<16x32xf32>
    %102 = math.exp %101 : vector<16x32xf32>
    %cst_36 = arith.constant 1.000000e+00 : f32
    %103 = vector.broadcast %cst_36 : f32 to vector<16x32xf32>
    %104 = arith.addf %103, %102 : vector<16x32xf32>
    %105 = arith.divf %103, %104 : vector<16x32xf32>
    %106 = vector.extract_strided_slice %99 {offsets = [0, 32], sizes = [16, 32], strides = [1, 1]} : vector<16x128xf32> to vector<16x32xf32>
    %107 = arith.negf %106 : vector<16x32xf32>
    %108 = math.exp %107 : vector<16x32xf32>
    %cst_37 = arith.constant 1.000000e+00 : f32
    %109 = vector.broadcast %cst_37 : f32 to vector<16x32xf32>
    %110 = arith.addf %109, %108 : vector<16x32xf32>
    %111 = arith.divf %109, %110 : vector<16x32xf32>
    %112 = vector.extract_strided_slice %99 {offsets = [0, 64], sizes = [16, 32], strides = [1, 1]} : vector<16x128xf32> to vector<16x32xf32>
    %113 = math.tanh %112 : vector<16x32xf32>
    %114 = vector.extract_strided_slice %99 {offsets = [0, 96], sizes = [16, 32], strides = [1, 1]} : vector<16x128xf32> to vector<16x32xf32>
    %115 = arith.negf %114 : vector<16x32xf32>
    %116 = math.exp %115 : vector<16x32xf32>
    %cst_38 = arith.constant 1.000000e+00 : f32
    %117 = vector.broadcast %cst_38 : f32 to vector<16x32xf32>
    %118 = arith.addf %117, %116 : vector<16x32xf32>
    %119 = arith.divf %117, %118 : vector<16x32xf32>
    %120 = arith.mulf %111, %84 : vector<16x32xf32>
    %121 = arith.mulf %105, %113 : vector<16x32xf32>
    %122 = arith.addf %120, %121 : vector<16x32xf32>
    %123 = math.tanh %122 : vector<16x32xf32>
    %124 = arith.mulf %119, %123 : vector<16x32xf32>
    %125 = arith.truncf %124 : vector<16x32xf32> to vector<16x32xbf16>
    %126 = vector.extract_strided_slice %125 {offsets = [0, 0], sizes = [8, 32], strides = [1, 1]} : vector<16x32xbf16> to vector<8x32xbf16>
    %c16 = arith.constant 16 : index
    %c0_39 = arith.constant 0 : index
    %127 = vector.load %arg13[%c16, %c0_39] : memref<56x64xbf16, #tpu.memory_space<vmem>>, vector<8x32xbf16>
    tpu.vector_store %arg13[%c16, %c0_39], %126 {strides = array<i32>} : memref<56x64xbf16, #tpu.memory_space<vmem>>, vector<8x32xbf16>,
    %128 = vector.extract_strided_slice %125 {offsets = [8, 0], sizes = [8, 32], strides = [1, 1]} : vector<16x32xbf16> to vector<8x32xbf16>
    %c32_40 = arith.constant 32 : index
    %c32_41 = arith.constant 32 : index
    %129 = vector.load %arg13[%c32_40, %c32_41] : memref<56x64xbf16, #tpu.memory_space<vmem>>, vector<8x32xbf16>
    tpu.vector_store %arg13[%c32_40, %c32_41], %128 {strides = array<i32>} : memref<56x64xbf16, #tpu.memory_space<vmem>>, vector<8x32xbf16>,
    %cst_42 = arith.constant dense<0.000000e+00> : vector<16x256xf32>
    %130 = tpu.matmul %125, %1, %cst_42 {dimension_numbers = #tpu.dot_dimension_numbers<[1], [0], [0], [1], [0, 0, 1, 1], [], []>} : vector<16x32xbf16>, vector<32x256xbf16>, vector<16x256xf32> -> vector<16x256xf32>
    %131 = vector.extract_strided_slice %13 {offsets = [24, 0], sizes = [8, 128], strides = [1, 1]} : vector<56x256xf32> to vector<8x128xf32>
    %132 = vector.extract_strided_slice %130 {offsets = [0, 0], sizes = [8, 128], strides = [1, 1]} : vector<16x256xf32> to vector<8x128xf32>
    %133 = arith.addf %131, %132 : vector<8x128xf32>
    %134 = vector.extract_strided_slice %13 {offsets = [24, 128], sizes = [8, 128], strides = [1, 1]} : vector<56x256xf32> to vector<8x128xf32>
    %135 = vector.extract_strided_slice %130 {offsets = [8, 128], sizes = [8, 128], strides = [1, 1]} : vector<16x256xf32> to vector<8x128xf32>
    %136 = arith.addf %134, %135 : vector<8x128xf32>
    %137 = tpu.concatenate %133, %136 in 0 : vector<8x128xf32>, vector<8x128xf32> -> vector<16x128xf32>
    %138 = vector.extract_strided_slice %137 {offsets = [0, 0], sizes = [16, 32], strides = [1, 1]} : vector<16x128xf32> to vector<16x32xf32>
    %139 = arith.negf %138 : vector<16x32xf32>
    %140 = math.exp %139 : vector<16x32xf32>
    %cst_43 = arith.constant 1.000000e+00 : f32
    %141 = vector.broadcast %cst_43 : f32 to vector<16x32xf32>
    %142 = arith.addf %141, %140 : vector<16x32xf32>
    %143 = arith.divf %141, %142 : vector<16x32xf32>
    %144 = vector.extract_strided_slice %137 {offsets = [0, 32], sizes = [16, 32], strides = [1, 1]} : vector<16x128xf32> to vector<16x32xf32>
    %145 = arith.negf %144 : vector<16x32xf32>
    %146 = math.exp %145 : vector<16x32xf32>
    %cst_44 = arith.constant 1.000000e+00 : f32
    %147 = vector.broadcast %cst_44 : f32 to vector<16x32xf32>
    %148 = arith.addf %147, %146 : vector<16x32xf32>
    %149 = arith.divf %147, %148 : vector<16x32xf32>
    %150 = vector.extract_strided_slice %137 {offsets = [0, 64], sizes = [16, 32], strides = [1, 1]} : vector<16x128xf32> to vector<16x32xf32>
    %151 = math.tanh %150 : vector<16x32xf32>
    %152 = vector.extract_strided_slice %137 {offsets = [0, 96], sizes = [16, 32], strides = [1, 1]} : vector<16x128xf32> to vector<16x32xf32>
    %153 = arith.negf %152 : vector<16x32xf32>
    %154 = math.exp %153 : vector<16x32xf32>
    %cst_45 = arith.constant 1.000000e+00 : f32
    %155 = vector.broadcast %cst_45 : f32 to vector<16x32xf32>
    %156 = arith.addf %155, %154 : vector<16x32xf32>
    %157 = arith.divf %155, %156 : vector<16x32xf32>
    %158 = arith.mulf %149, %122 : vector<16x32xf32>
    %159 = arith.mulf %143, %151 : vector<16x32xf32>
    %160 = arith.addf %158, %159 : vector<16x32xf32>
    %161 = math.tanh %160 : vector<16x32xf32>
    %162 = arith.mulf %157, %161 : vector<16x32xf32>
    %163 = arith.truncf %162 : vector<16x32xf32> to vector<16x32xbf16>
    %164 = vector.extract_strided_slice %163 {offsets = [0, 0], sizes = [8, 32], strides = [1, 1]} : vector<16x32xbf16> to vector<8x32xbf16>
    %c24 = arith.constant 24 : index
    %c0_46 = arith.constant 0 : index
    %165 = vector.load %arg13[%c24, %c0_46] : memref<56x64xbf16, #tpu.memory_space<vmem>>, vector<8x32xbf16>
    tpu.vector_store %arg13[%c24, %c0_46], %164 {strides = array<i32>} : memref<56x64xbf16, #tpu.memory_space<vmem>>, vector<8x32xbf16>,
    %166 = vector.extract_strided_slice %163 {offsets = [8, 0], sizes = [8, 32], strides = [1, 1]} : vector<16x32xbf16> to vector<8x32xbf16>
    %c24_47 = arith.constant 24 : index
    %c32_48 = arith.constant 32 : index
    %167 = vector.load %arg13[%c24_47, %c32_48] : memref<56x64xbf16, #tpu.memory_space<vmem>>, vector<8x32xbf16>
    tpu.vector_store %arg13[%c24_47, %c32_48], %166 {strides = array<i32>} : memref<56x64xbf16, #tpu.memory_space<vmem>>, vector<8x32xbf16>,
    %cst_49 = arith.constant dense<0.000000e+00> : vector<16x256xf32>
    %168 = tpu.matmul %163, %1, %cst_49 {dimension_numbers = #tpu.dot_dimension_numbers<[1], [0], [0], [1], [0, 0, 1, 1], [], []>} : vector<16x32xbf16>, vector<32x256xbf16>, vector<16x256xf32> -> vector<16x256xf32>
    %169 = vector.extract_strided_slice %13 {offsets = [32, 0], sizes = [8, 128], strides = [1, 1]} : vector<56x256xf32> to vector<8x128xf32>
    %170 = vector.extract_strided_slice %168 {offsets = [0, 0], sizes = [8, 128], strides = [1, 1]} : vector<16x256xf32> to vector<8x128xf32>
    %171 = arith.addf %169, %170 : vector<8x128xf32>
    %172 = vector.extract_strided_slice %13 {offsets = [16, 128], sizes = [8, 128], strides = [1, 1]} : vector<56x256xf32> to vector<8x128xf32>
    %173 = vector.extract_strided_slice %168 {offsets = [8, 128], sizes = [8, 128], strides = [1, 1]} : vector<16x256xf32> to vector<8x128xf32>
    %174 = arith.addf %172, %173 : vector<8x128xf32>
    %175 = tpu.concatenate %171, %174 in 0 : vector<8x128xf32>, vector<8x128xf32> -> vector<16x128xf32>
    %176 = vector.extract_strided_slice %175 {offsets = [0, 0], sizes = [16, 32], strides = [1, 1]} : vector<16x128xf32> to vector<16x32xf32>
    %177 = arith.negf %176 : vector<16x32xf32>
    %178 = math.exp %177 : vector<16x32xf32>
    %cst_50 = arith.constant 1.000000e+00 : f32
    %179 = vector.broadcast %cst_50 : f32 to vector<16x32xf32>
    %180 = arith.addf %179, %178 : vector<16x32xf32>
    %181 = arith.divf %179, %180 : vector<16x32xf32>
    %182 = vector.extract_strided_slice %175 {offsets = [0, 32], sizes = [16, 32], strides = [1, 1]} : vector<16x128xf32> to vector<16x32xf32>
    %183 = arith.negf %182 : vector<16x32xf32>
    %184 = math.exp %183 : vector<16x32xf32>
    %cst_51 = arith.constant 1.000000e+00 : f32
    %185 = vector.broadcast %cst_51 : f32 to vector<16x32xf32>
    %186 = arith.addf %185, %184 : vector<16x32xf32>
    %187 = arith.divf %185, %186 : vector<16x32xf32>
    %188 = vector.extract_strided_slice %175 {offsets = [0, 64], sizes = [16, 32], strides = [1, 1]} : vector<16x128xf32> to vector<16x32xf32>
    %189 = math.tanh %188 : vector<16x32xf32>
    %190 = vector.extract_strided_slice %175 {offsets = [0, 96], sizes = [16, 32], strides = [1, 1]} : vector<16x128xf32> to vector<16x32xf32>
    %191 = arith.negf %190 : vector<16x32xf32>
    %192 = math.exp %191 : vector<16x32xf32>
    %cst_52 = arith.constant 1.000000e+00 : f32
    %193 = vector.broadcast %cst_52 : f32 to vector<16x32xf32>
    %194 = arith.addf %193, %192 : vector<16x32xf32>
    %195 = arith.divf %193, %194 : vector<16x32xf32>
    %196 = arith.mulf %187, %160 : vector<16x32xf32>
    %197 = arith.mulf %181, %189 : vector<16x32xf32>
    %198 = arith.addf %196, %197 : vector<16x32xf32>
    %199 = math.tanh %198 : vector<16x32xf32>
    %200 = arith.mulf %195, %199 : vector<16x32xf32>
    %201 = arith.truncf %200 : vector<16x32xf32> to vector<16x32xbf16>
    %202 = vector.extract_strided_slice %201 {offsets = [0, 0], sizes = [8, 32], strides = [1, 1]} : vector<16x32xbf16> to vector<8x32xbf16>
    %c32_53 = arith.constant 32 : index
    %c0_54 = arith.constant 0 : index
    %203 = vector.load %arg13[%c32_53, %c0_54] : memref<56x64xbf16, #tpu.memory_space<vmem>>, vector<8x32xbf16>
    tpu.vector_store %arg13[%c32_53, %c0_54], %202 {strides = array<i32>} : memref<56x64xbf16, #tpu.memory_space<vmem>>, vector<8x32xbf16>,
    %204 = vector.extract_strided_slice %201 {offsets = [8, 0], sizes = [8, 32], strides = [1, 1]} : vector<16x32xbf16> to vector<8x32xbf16>
    %c16_55 = arith.constant 16 : index
    %c32_56 = arith.constant 32 : index
    %205 = vector.load %arg13[%c16_55, %c32_56] : memref<56x64xbf16, #tpu.memory_space<vmem>>, vector<8x32xbf16>
    tpu.vector_store %arg13[%c16_55, %c32_56], %204 {strides = array<i32>} : memref<56x64xbf16, #tpu.memory_space<vmem>>, vector<8x32xbf16>,
    %cst_57 = arith.constant dense<0.000000e+00> : vector<16x256xf32>
    %206 = tpu.matmul %201, %1, %cst_57 {dimension_numbers = #tpu.dot_dimension_numbers<[1], [0], [0], [1], [0, 0, 1, 1], [], []>} : vector<16x32xbf16>, vector<32x256xbf16>, vector<16x256xf32> -> vector<16x256xf32>
    %207 = vector.extract_strided_slice %13 {offsets = [40, 0], sizes = [8, 128], strides = [1, 1]} : vector<56x256xf32> to vector<8x128xf32>
    %208 = vector.extract_strided_slice %206 {offsets = [0, 0], sizes = [8, 128], strides = [1, 1]} : vector<16x256xf32> to vector<8x128xf32>
    %209 = arith.addf %207, %208 : vector<8x128xf32>
    %210 = vector.extract_strided_slice %13 {offsets = [8, 128], sizes = [8, 128], strides = [1, 1]} : vector<56x256xf32> to vector<8x128xf32>
    %211 = vector.extract_strided_slice %206 {offsets = [8, 128], sizes = [8, 128], strides = [1, 1]} : vector<16x256xf32> to vector<8x128xf32>
    %212 = arith.addf %210, %211 : vector<8x128xf32>
    %213 = tpu.concatenate %209, %212 in 0 : vector<8x128xf32>, vector<8x128xf32> -> vector<16x128xf32>
    %214 = vector.extract_strided_slice %213 {offsets = [0, 0], sizes = [16, 32], strides = [1, 1]} : vector<16x128xf32> to vector<16x32xf32>
    %215 = arith.negf %214 : vector<16x32xf32>
    %216 = math.exp %215 : vector<16x32xf32>
    %cst_58 = arith.constant 1.000000e+00 : f32
    %217 = vector.broadcast %cst_58 : f32 to vector<16x32xf32>
    %218 = arith.addf %217, %216 : vector<16x32xf32>
    %219 = arith.divf %217, %218 : vector<16x32xf32>
    %220 = vector.extract_strided_slice %213 {offsets = [0, 32], sizes = [16, 32], strides = [1, 1]} : vector<16x128xf32> to vector<16x32xf32>
    %221 = arith.negf %220 : vector<16x32xf32>
    %222 = math.exp %221 : vector<16x32xf32>
    %cst_59 = arith.constant 1.000000e+00 : f32
    %223 = vector.broadcast %cst_59 : f32 to vector<16x32xf32>
    %224 = arith.addf %223, %222 : vector<16x32xf32>
    %225 = arith.divf %223, %224 : vector<16x32xf32>
    %226 = vector.extract_strided_slice %213 {offsets = [0, 64], sizes = [16, 32], strides = [1, 1]} : vector<16x128xf32> to vector<16x32xf32>
    %227 = math.tanh %226 : vector<16x32xf32>
    %228 = vector.extract_strided_slice %213 {offsets = [0, 96], sizes = [16, 32], strides = [1, 1]} : vector<16x128xf32> to vector<16x32xf32>
    %229 = arith.negf %228 : vector<16x32xf32>
    %230 = math.exp %229 : vector<16x32xf32>
    %cst_60 = arith.constant 1.000000e+00 : f32
    %231 = vector.broadcast %cst_60 : f32 to vector<16x32xf32>
    %232 = arith.addf %231, %230 : vector<16x32xf32>
    %233 = arith.divf %231, %232 : vector<16x32xf32>
    %234 = arith.mulf %225, %198 : vector<16x32xf32>
    %235 = arith.mulf %219, %227 : vector<16x32xf32>
    %236 = arith.addf %234, %235 : vector<16x32xf32>
    %237 = math.tanh %236 : vector<16x32xf32>
    %238 = arith.mulf %233, %237 : vector<16x32xf32>
    %239 = arith.truncf %238 : vector<16x32xf32> to vector<16x32xbf16>
    %240 = vector.extract_strided_slice %239 {offsets = [0, 0], sizes = [8, 32], strides = [1, 1]} : vector<16x32xbf16> to vector<8x32xbf16>
    %c40_61 = arith.constant 40 : index
    %c0_62 = arith.constant 0 : index
    %241 = vector.load %arg13[%c40_61, %c0_62] : memref<56x64xbf16, #tpu.memory_space<vmem>>, vector<8x32xbf16>
    tpu.vector_store %arg13[%c40_61, %c0_62], %240 {strides = array<i32>} : memref<56x64xbf16, #tpu.memory_space<vmem>>, vector<8x32xbf16>,
    %242 = vector.extract_strided_slice %239 {offsets = [8, 0], sizes = [8, 32], strides = [1, 1]} : vector<16x32xbf16> to vector<8x32xbf16>
    %c8_63 = arith.constant 8 : index
    %c32_64 = arith.constant 32 : index
    %243 = vector.load %arg13[%c8_63, %c32_64] : memref<56x64xbf16, #tpu.memory_space<vmem>>, vector<8x32xbf16>
    tpu.vector_store %arg13[%c8_63, %c32_64], %242 {strides = array<i32>} : memref<56x64xbf16, #tpu.memory_space<vmem>>, vector<8x32xbf16>,
    %cst_65 = arith.constant dense<0.000000e+00> : vector<16x256xf32>
    %244 = tpu.matmul %239, %1, %cst_65 {dimension_numbers = #tpu.dot_dimension_numbers<[1], [0], [0], [1], [0, 0, 1, 1], [], []>} : vector<16x32xbf16>, vector<32x256xbf16>, vector<16x256xf32> -> vector<16x256xf32>
    %245 = vector.extract_strided_slice %13 {offsets = [48, 0], sizes = [8, 128], strides = [1, 1]} : vector<56x256xf32> to vector<8x128xf32>
    %246 = vector.extract_strided_slice %244 {offsets = [0, 0], sizes = [8, 128], strides = [1, 1]} : vector<16x256xf32> to vector<8x128xf32>
    %247 = arith.addf %245, %246 : vector<8x128xf32>
    %248 = vector.extract_strided_slice %13 {offsets = [0, 128], sizes = [8, 128], strides = [1, 1]} : vector<56x256xf32> to vector<8x128xf32>
    %249 = vector.extract_strided_slice %244 {offsets = [8, 128], sizes = [8, 128], strides = [1, 1]} : vector<16x256xf32> to vector<8x128xf32>
    %250 = arith.addf %248, %249 : vector<8x128xf32>
    %251 = tpu.concatenate %247, %250 in 0 : vector<8x128xf32>, vector<8x128xf32> -> vector<16x128xf32>
    %252 = vector.extract_strided_slice %251 {offsets = [0, 0], sizes = [16, 32], strides = [1, 1]} : vector<16x128xf32> to vector<16x32xf32>
    %253 = arith.negf %252 : vector<16x32xf32>
    %254 = math.exp %253 : vector<16x32xf32>
    %cst_66 = arith.constant 1.000000e+00 : f32
    %255 = vector.broadcast %cst_66 : f32 to vector<16x32xf32>
    %256 = arith.addf %255, %254 : vector<16x32xf32>
    %257 = arith.divf %255, %256 : vector<16x32xf32>
    %258 = vector.extract_strided_slice %251 {offsets = [0, 32], sizes = [16, 32], strides = [1, 1]} : vector<16x128xf32> to vector<16x32xf32>
    %259 = arith.negf %258 : vector<16x32xf32>
    %260 = math.exp %259 : vector<16x32xf32>
    %cst_67 = arith.constant 1.000000e+00 : f32
    %261 = vector.broadcast %cst_67 : f32 to vector<16x32xf32>
    %262 = arith.addf %261, %260 : vector<16x32xf32>
    %263 = arith.divf %261, %262 : vector<16x32xf32>
    %264 = vector.extract_strided_slice %251 {offsets = [0, 64], sizes = [16, 32], strides = [1, 1]} : vector<16x128xf32> to vector<16x32xf32>
    %265 = math.tanh %264 : vector<16x32xf32>
    %266 = vector.extract_strided_slice %251 {offsets = [0, 96], sizes = [16, 32], strides = [1, 1]} : vector<16x128xf32> to vector<16x32xf32>
    %267 = arith.negf %266 : vector<16x32xf32>
    %268 = math.exp %267 : vector<16x32xf32>
    %cst_68 = arith.constant 1.000000e+00 : f32
    %269 = vector.broadcast %cst_68 : f32 to vector<16x32xf32>
    %270 = arith.addf %269, %268 : vector<16x32xf32>
    %271 = arith.divf %269, %270 : vector<16x32xf32>
    %272 = arith.mulf %263, %236 : vector<16x32xf32>
    %273 = arith.mulf %257, %265 : vector<16x32xf32>
    %274 = arith.addf %272, %273 : vector<16x32xf32>
    %275 = math.tanh %274 : vector<16x32xf32>
    %276 = arith.mulf %271, %275 : vector<16x32xf32>
    %277 = arith.truncf %276 : vector<16x32xf32> to vector<16x32xbf16>
    %278 = vector.extract_strided_slice %277 {offsets = [0, 0], sizes = [8, 32], strides = [1, 1]} : vector<16x32xbf16> to vector<8x32xbf16>
    %c48_69 = arith.constant 48 : index
    %c0_70 = arith.constant 0 : index
    %279 = vector.load %arg13[%c48_69, %c0_70] : memref<56x64xbf16, #tpu.memory_space<vmem>>, vector<8x32xbf16>
    tpu.vector_store %arg13[%c48_69, %c0_70], %278 {strides = array<i32>} : memref<56x64xbf16, #tpu.memory_space<vmem>>, vector<8x32xbf16>,
    %280 = vector.extract_strided_slice %277 {offsets = [8, 0], sizes = [8, 32], strides = [1, 1]} : vector<16x32xbf16> to vector<8x32xbf16>
    %c0_71 = arith.constant 0 : index
    %c32_72 = arith.constant 32 : index
    %281 = vector.load %arg13[%c0_71, %c32_72] : memref<56x64xbf16, #tpu.memory_space<vmem>>, vector<8x32xbf16>
    tpu.vector_store %arg13[%c0_71, %c32_72], %280 {strides = array<i32>} : memref<56x64xbf16, #tpu.memory_space<vmem>>, vector<8x32xbf16>,
    %c0_73 = arith.constant 0 : index
    %c0_74 = arith.constant 0 : index
    %282 = vector.load %arg13[%c0_73, %c0_74] : memref<56x64xbf16, #tpu.memory_space<vmem>>, vector<56x64xbf16>
    %283 = vector.extract_strided_slice %282 {offsets = [0, 0], sizes = [32, 64], strides = [1, 1]} : vector<56x64xbf16> to vector<32x64xbf16>
    %cst_75 = arith.constant dense<0.000000e+00> : vector<32x128xf32>
    %284 = tpu.matmul %283, %3, %cst_75 {dimension_numbers = #tpu.dot_dimension_numbers<[1], [0], [0], [1], [0, 0, 1, 1], [], []>} : vector<32x64xbf16>, vector<64x128xbf16>, vector<32x128xf32> -> vector<32x128xf32>
    %285 = vector.broadcast %5 : vector<1x128xf32> to vector<32x128xf32>
    %286 = arith.addf %284, %285 : vector<32x128xf32>
    %287 = vector.extract_strided_slice %282 {offsets = [24, 0], sizes = [32, 64], strides = [1, 1]} : vector<56x64xbf16> to vector<32x64xbf16>
    %cst_76 = arith.constant dense<0.000000e+00> : vector<32x128xf32>
    %288 = tpu.matmul %287, %4, %cst_76 {dimension_numbers = #tpu.dot_dimension_numbers<[1], [0], [0], [1], [0, 0, 1, 1], [], []>} : vector<32x64xbf16>, vector<64x128xbf16>, vector<32x128xf32> -> vector<32x128xf32>
    %289 = vector.broadcast %6 : vector<1x128xf32> to vector<32x128xf32>
    %290 = arith.addf %288, %289 : vector<32x128xf32>
    %cst_77 = arith.constant 0.000000e+00 : bf16
    %291 = vector.broadcast %cst_77 : bf16 to vector<8x32xbf16>
    %cst_78 = arith.constant 0.000000e+00 : bf16
    %292 = vector.broadcast %cst_78 : bf16 to vector<8x32xbf16>
    %cst_79 = arith.constant 0.000000e+00 : f32
    %293 = vector.broadcast %cst_79 : f32 to vector<8x32xf32>
    %cst_80 = arith.constant 0.000000e+00 : f32
    %294 = vector.broadcast %cst_80 : f32 to vector<8x32xf32>
    %295 = tpu.concatenate %291, %292 in 0 : vector<8x32xbf16>, vector<8x32xbf16> -> vector<16x32xbf16>
    %cst_81 = arith.constant dense<0.000000e+00> : vector<16x256xf32>
    %296 = tpu.matmul %295, %7, %cst_81 {dimension_numbers = #tpu.dot_dimension_numbers<[1], [0], [0], [1], [0, 0, 1, 1], [], []>} : vector<16x32xbf16>, vector<32x256xbf16>, vector<16x256xf32> -> vector<16x256xf32>
    %297 = vector.extract_strided_slice %286 {offsets = [0, 0], sizes = [8, 128], strides = [1, 1]} : vector<32x128xf32> to vector<8x128xf32>
    %298 = vector.extract_strided_slice %296 {offsets = [0, 0], sizes = [8, 128], strides = [1, 1]} : vector<16x256xf32> to vector<8x128xf32>
    %299 = arith.addf %297, %298 : vector<8x128xf32>
    %300 = vector.extract_strided_slice %290 {offsets = [24, 0], sizes = [8, 128], strides = [1, 1]} : vector<32x128xf32> to vector<8x128xf32>
    %301 = vector.extract_strided_slice %296 {offsets = [8, 128], sizes = [8, 128], strides = [1, 1]} : vector<16x256xf32> to vector<8x128xf32>
    %302 = arith.addf %300, %301 : vector<8x128xf32>
    %303 = tpu.concatenate %299, %302 in 0 : vector<8x128xf32>, vector<8x128xf32> -> vector<16x128xf32>
    %304 = tpu.concatenate %293, %294 in 0 : vector<8x32xf32>, vector<8x32xf32> -> vector<16x32xf32>
    %305 = vector.extract_strided_slice %303 {offsets = [0, 0], sizes = [16, 32], strides = [1, 1]} : vector<16x128xf32> to vector<16x32xf32>
    %306 = arith.negf %305 : vector<16x32xf32>
    %307 = math.exp %306 : vector<16x32xf32>
    %cst_82 = arith.constant 1.000000e+00 : f32
    %308 = vector.broadcast %cst_82 : f32 to vector<16x32xf32>
    %309 = arith.addf %308, %307 : vector<16x32xf32>
    %310 = arith.divf %308, %309 : vector<16x32xf32>
    %311 = vector.extract_strided_slice %303 {offsets = [0, 32], sizes = [16, 32], strides = [1, 1]} : vector<16x128xf32> to vector<16x32xf32>
    %312 = arith.negf %311 : vector<16x32xf32>
    %313 = math.exp %312 : vector<16x32xf32>
    %cst_83 = arith.constant 1.000000e+00 : f32
    %314 = vector.broadcast %cst_83 : f32 to vector<16x32xf32>
    %315 = arith.addf %314, %313 : vector<16x32xf32>
    %316 = arith.divf %314, %315 : vector<16x32xf32>
    %317 = vector.extract_strided_slice %303 {offsets = [0, 64], sizes = [16, 32], strides = [1, 1]} : vector<16x128xf32> to vector<16x32xf32>
    %318 = math.tanh %317 : vector<16x32xf32>
    %319 = vector.extract_strided_slice %303 {offsets = [0, 96], sizes = [16, 32], strides = [1, 1]} : vector<16x128xf32> to vector<16x32xf32>
    %320 = arith.negf %319 : vector<16x32xf32>
    %321 = math.exp %320 : vector<16x32xf32>
    %cst_84 = arith.constant 1.000000e+00 : f32
    %322 = vector.broadcast %cst_84 : f32 to vector<16x32xf32>
    %323 = arith.addf %322, %321 : vector<16x32xf32>
    %324 = arith.divf %322, %323 : vector<16x32xf32>
    %325 = arith.mulf %316, %304 : vector<16x32xf32>
    %326 = arith.mulf %310, %318 : vector<16x32xf32>
    %327 = arith.addf %325, %326 : vector<16x32xf32>
    %328 = math.tanh %327 : vector<16x32xf32>
    %329 = arith.mulf %324, %328 : vector<16x32xf32>
    %330 = arith.truncf %329 : vector<16x32xf32> to vector<16x32xbf16>
    %331 = vector.extract_strided_slice %330 {offsets = [0, 0], sizes = [8, 32], strides = [1, 1]} : vector<16x32xbf16> to vector<8x32xbf16>
    %332 = vector.extract_strided_slice %330 {offsets = [8, 0], sizes = [8, 32], strides = [1, 1]} : vector<16x32xbf16> to vector<8x32xbf16>
    %333 = vector.extract_strided_slice %327 {offsets = [0, 0], sizes = [8, 32], strides = [1, 1]} : vector<16x32xf32> to vector<8x32xf32>
    %334 = vector.extract_strided_slice %327 {offsets = [8, 0], sizes = [8, 32], strides = [1, 1]} : vector<16x32xf32> to vector<8x32xf32>
    %335 = tpu.concatenate %331, %332 in 0 : vector<8x32xbf16>, vector<8x32xbf16> -> vector<16x32xbf16>
    %cst_85 = arith.constant dense<0.000000e+00> : vector<16x256xf32>
    %336 = tpu.matmul %335, %7, %cst_85 {dimension_numbers = #tpu.dot_dimension_numbers<[1], [0], [0], [1], [0, 0, 1, 1], [], []>} : vector<16x32xbf16>, vector<32x256xbf16>, vector<16x256xf32> -> vector<16x256xf32>
    %337 = vector.extract_strided_slice %286 {offsets = [8, 0], sizes = [8, 128], strides = [1, 1]} : vector<32x128xf32> to vector<8x128xf32>
    %338 = vector.extract_strided_slice %336 {offsets = [0, 0], sizes = [8, 128], strides = [1, 1]} : vector<16x256xf32> to vector<8x128xf32>
    %339 = arith.addf %337, %338 : vector<8x128xf32>
    %340 = vector.extract_strided_slice %290 {offsets = [16, 0], sizes = [8, 128], strides = [1, 1]} : vector<32x128xf32> to vector<8x128xf32>
    %341 = vector.extract_strided_slice %336 {offsets = [8, 128], sizes = [8, 128], strides = [1, 1]} : vector<16x256xf32> to vector<8x128xf32>
    %342 = arith.addf %340, %341 : vector<8x128xf32>
    %343 = tpu.concatenate %339, %342 in 0 : vector<8x128xf32>, vector<8x128xf32> -> vector<16x128xf32>
    %344 = tpu.concatenate %333, %334 in 0 : vector<8x32xf32>, vector<8x32xf32> -> vector<16x32xf32>
    %345 = vector.extract_strided_slice %343 {offsets = [0, 0], sizes = [16, 32], strides = [1, 1]} : vector<16x128xf32> to vector<16x32xf32>
    %346 = arith.negf %345 : vector<16x32xf32>
    %347 = math.exp %346 : vector<16x32xf32>
    %cst_86 = arith.constant 1.000000e+00 : f32
    %348 = vector.broadcast %cst_86 : f32 to vector<16x32xf32>
    %349 = arith.addf %348, %347 : vector<16x32xf32>
    %350 = arith.divf %348, %349 : vector<16x32xf32>
    %351 = vector.extract_strided_slice %343 {offsets = [0, 32], sizes = [16, 32], strides = [1, 1]} : vector<16x128xf32> to vector<16x32xf32>
    %352 = arith.negf %351 : vector<16x32xf32>
    %353 = math.exp %352 : vector<16x32xf32>
    %cst_87 = arith.constant 1.000000e+00 : f32
    %354 = vector.broadcast %cst_87 : f32 to vector<16x32xf32>
    %355 = arith.addf %354, %353 : vector<16x32xf32>
    %356 = arith.divf %354, %355 : vector<16x32xf32>
    %357 = vector.extract_strided_slice %343 {offsets = [0, 64], sizes = [16, 32], strides = [1, 1]} : vector<16x128xf32> to vector<16x32xf32>
    %358 = math.tanh %357 : vector<16x32xf32>
    %359 = vector.extract_strided_slice %343 {offsets = [0, 96], sizes = [16, 32], strides = [1, 1]} : vector<16x128xf32> to vector<16x32xf32>
    %360 = arith.negf %359 : vector<16x32xf32>
    %361 = math.exp %360 : vector<16x32xf32>
    %cst_88 = arith.constant 1.000000e+00 : f32
    %362 = vector.broadcast %cst_88 : f32 to vector<16x32xf32>
    %363 = arith.addf %362, %361 : vector<16x32xf32>
    %364 = arith.divf %362, %363 : vector<16x32xf32>
    %365 = arith.mulf %356, %344 : vector<16x32xf32>
    %366 = arith.mulf %350, %358 : vector<16x32xf32>
    %367 = arith.addf %365, %366 : vector<16x32xf32>
    %368 = math.tanh %367 : vector<16x32xf32>
    %369 = arith.mulf %364, %368 : vector<16x32xf32>
    %370 = arith.truncf %369 : vector<16x32xf32> to vector<16x32xbf16>
    %371 = vector.extract_strided_slice %370 {offsets = [0, 0], sizes = [8, 32], strides = [1, 1]} : vector<16x32xbf16> to vector<8x32xbf16>
    %372 = vector.extract_strided_slice %370 {offsets = [8, 0], sizes = [8, 32], strides = [1, 1]} : vector<16x32xbf16> to vector<8x32xbf16>
    %373 = vector.extract_strided_slice %367 {offsets = [0, 0], sizes = [8, 32], strides = [1, 1]} : vector<16x32xf32> to vector<8x32xf32>
    %374 = vector.extract_strided_slice %367 {offsets = [8, 0], sizes = [8, 32], strides = [1, 1]} : vector<16x32xf32> to vector<8x32xf32>
    %375 = tpu.concatenate %371, %372 in 0 : vector<8x32xbf16>, vector<8x32xbf16> -> vector<16x32xbf16>
    %cst_89 = arith.constant dense<0.000000e+00> : vector<16x256xf32>
    %376 = tpu.matmul %375, %7, %cst_89 {dimension_numbers = #tpu.dot_dimension_numbers<[1], [0], [0], [1], [0, 0, 1, 1], [], []>} : vector<16x32xbf16>, vector<32x256xbf16>, vector<16x256xf32> -> vector<16x256xf32>
    %377 = vector.extract_strided_slice %286 {offsets = [16, 0], sizes = [8, 128], strides = [1, 1]} : vector<32x128xf32> to vector<8x128xf32>
    %378 = vector.extract_strided_slice %376 {offsets = [0, 0], sizes = [8, 128], strides = [1, 1]} : vector<16x256xf32> to vector<8x128xf32>
    %379 = arith.addf %377, %378 : vector<8x128xf32>
    %380 = vector.extract_strided_slice %290 {offsets = [8, 0], sizes = [8, 128], strides = [1, 1]} : vector<32x128xf32> to vector<8x128xf32>
    %381 = vector.extract_strided_slice %376 {offsets = [8, 128], sizes = [8, 128], strides = [1, 1]} : vector<16x256xf32> to vector<8x128xf32>
    %382 = arith.addf %380, %381 : vector<8x128xf32>
    %383 = tpu.concatenate %379, %382 in 0 : vector<8x128xf32>, vector<8x128xf32> -> vector<16x128xf32>
    %384 = tpu.concatenate %373, %374 in 0 : vector<8x32xf32>, vector<8x32xf32> -> vector<16x32xf32>
    %385 = vector.extract_strided_slice %383 {offsets = [0, 0], sizes = [16, 32], strides = [1, 1]} : vector<16x128xf32> to vector<16x32xf32>
    %386 = arith.negf %385 : vector<16x32xf32>
    %387 = math.exp %386 : vector<16x32xf32>
    %cst_90 = arith.constant 1.000000e+00 : f32
    %388 = vector.broadcast %cst_90 : f32 to vector<16x32xf32>
    %389 = arith.addf %388, %387 : vector<16x32xf32>
    %390 = arith.divf %388, %389 : vector<16x32xf32>
    %391 = vector.extract_strided_slice %383 {offsets = [0, 32], sizes = [16, 32], strides = [1, 1]} : vector<16x128xf32> to vector<16x32xf32>
    %392 = arith.negf %391 : vector<16x32xf32>
    %393 = math.exp %392 : vector<16x32xf32>
    %cst_91 = arith.constant 1.000000e+00 : f32
    %394 = vector.broadcast %cst_91 : f32 to vector<16x32xf32>
    %395 = arith.addf %394, %393 : vector<16x32xf32>
    %396 = arith.divf %394, %395 : vector<16x32xf32>
    %397 = vector.extract_strided_slice %383 {offsets = [0, 64], sizes = [16, 32], strides = [1, 1]} : vector<16x128xf32> to vector<16x32xf32>
    %398 = math.tanh %397 : vector<16x32xf32>
    %399 = vector.extract_strided_slice %383 {offsets = [0, 96], sizes = [16, 32], strides = [1, 1]} : vector<16x128xf32> to vector<16x32xf32>
    %400 = arith.negf %399 : vector<16x32xf32>
    %401 = math.exp %400 : vector<16x32xf32>
    %cst_92 = arith.constant 1.000000e+00 : f32
    %402 = vector.broadcast %cst_92 : f32 to vector<16x32xf32>
    %403 = arith.addf %402, %401 : vector<16x32xf32>
    %404 = arith.divf %402, %403 : vector<16x32xf32>
    %405 = arith.mulf %396, %384 : vector<16x32xf32>
    %406 = arith.mulf %390, %398 : vector<16x32xf32>
    %407 = arith.addf %405, %406 : vector<16x32xf32>
    %408 = math.tanh %407 : vector<16x32xf32>
    %409 = arith.mulf %404, %408 : vector<16x32xf32>
    %410 = arith.truncf %409 : vector<16x32xf32> to vector<16x32xbf16>
    %411 = vector.extract_strided_slice %410 {offsets = [0, 0], sizes = [8, 32], strides = [1, 1]} : vector<16x32xbf16> to vector<8x32xbf16>
    %412 = vector.extract_strided_slice %410 {offsets = [8, 0], sizes = [8, 32], strides = [1, 1]} : vector<16x32xbf16> to vector<8x32xbf16>
    %413 = vector.extract_strided_slice %407 {offsets = [0, 0], sizes = [8, 32], strides = [1, 1]} : vector<16x32xf32> to vector<8x32xf32>
    %414 = vector.extract_strided_slice %407 {offsets = [8, 0], sizes = [8, 32], strides = [1, 1]} : vector<16x32xf32> to vector<8x32xf32>
    %415 = tpu.concatenate %411, %412 in 0 : vector<8x32xbf16>, vector<8x32xbf16> -> vector<16x32xbf16>
    %cst_93 = arith.constant dense<0.000000e+00> : vector<16x256xf32>
    %416 = tpu.matmul %415, %7, %cst_93 {dimension_numbers = #tpu.dot_dimension_numbers<[1], [0], [0], [1], [0, 0, 1, 1], [], []>} : vector<16x32xbf16>, vector<32x256xbf16>, vector<16x256xf32> -> vector<16x256xf32>
    %417 = vector.extract_strided_slice %286 {offsets = [24, 0], sizes = [8, 128], strides = [1, 1]} : vector<32x128xf32> to vector<8x128xf32>
    %418 = vector.extract_strided_slice %416 {offsets = [0, 0], sizes = [8, 128], strides = [1, 1]} : vector<16x256xf32> to vector<8x128xf32>
    %419 = arith.addf %417, %418 : vector<8x128xf32>
    %420 = vector.extract_strided_slice %290 {offsets = [0, 0], sizes = [8, 128], strides = [1, 1]} : vector<32x128xf32> to vector<8x128xf32>
    %421 = vector.extract_strided_slice %416 {offsets = [8, 128], sizes = [8, 128], strides = [1, 1]} : vector<16x256xf32> to vector<8x128xf32>
    %422 = arith.addf %420, %421 : vector<8x128xf32>
    %423 = tpu.concatenate %419, %422 in 0 : vector<8x128xf32>, vector<8x128xf32> -> vector<16x128xf32>
    %424 = tpu.concatenate %413, %414 in 0 : vector<8x32xf32>, vector<8x32xf32> -> vector<16x32xf32>
    %425 = vector.extract_strided_slice %423 {offsets = [0, 0], sizes = [16, 32], strides = [1, 1]} : vector<16x128xf32> to vector<16x32xf32>
    %426 = arith.negf %425 : vector<16x32xf32>
    %427 = math.exp %426 : vector<16x32xf32>
    %cst_94 = arith.constant 1.000000e+00 : f32
    %428 = vector.broadcast %cst_94 : f32 to vector<16x32xf32>
    %429 = arith.addf %428, %427 : vector<16x32xf32>
    %430 = arith.divf %428, %429 : vector<16x32xf32>
    %431 = vector.extract_strided_slice %423 {offsets = [0, 32], sizes = [16, 32], strides = [1, 1]} : vector<16x128xf32> to vector<16x32xf32>
    %432 = arith.negf %431 : vector<16x32xf32>
    %433 = math.exp %432 : vector<16x32xf32>
    %cst_95 = arith.constant 1.000000e+00 : f32
    %434 = vector.broadcast %cst_95 : f32 to vector<16x32xf32>
    %435 = arith.addf %434, %433 : vector<16x32xf32>
    %436 = arith.divf %434, %435 : vector<16x32xf32>
    %437 = vector.extract_strided_slice %423 {offsets = [0, 64], sizes = [16, 32], strides = [1, 1]} : vector<16x128xf32> to vector<16x32xf32>
    %438 = math.tanh %437 : vector<16x32xf32>
    %439 = vector.extract_strided_slice %423 {offsets = [0, 96], sizes = [16, 32], strides = [1, 1]} : vector<16x128xf32> to vector<16x32xf32>
    %440 = arith.negf %439 : vector<16x32xf32>
    %441 = math.exp %440 : vector<16x32xf32>
    %cst_96 = arith.constant 1.000000e+00 : f32
    %442 = vector.broadcast %cst_96 : f32 to vector<16x32xf32>
    %443 = arith.addf %442, %441 : vector<16x32xf32>
    %444 = arith.divf %442, %443 : vector<16x32xf32>
    %445 = arith.mulf %436, %424 : vector<16x32xf32>
    %446 = arith.mulf %430, %438 : vector<16x32xf32>
    %447 = arith.addf %445, %446 : vector<16x32xf32>
    %448 = math.tanh %447 : vector<16x32xf32>
    %449 = arith.mulf %444, %448 : vector<16x32xf32>
    %450 = arith.truncf %449 : vector<16x32xf32> to vector<16x32xbf16>
    %451 = vector.extract_strided_slice %450 {offsets = [0, 0], sizes = [8, 32], strides = [1, 1]} : vector<16x32xbf16> to vector<8x32xbf16>
    %452 = vector.extract_strided_slice %450 {offsets = [8, 0], sizes = [8, 32], strides = [1, 1]} : vector<16x32xbf16> to vector<8x32xbf16>
    %453 = tpu.concatenate %451, %452 in 1 : vector<8x32xbf16>, vector<8x32xbf16> -> vector<8x64xbf16>
    %cst_97 = arith.constant dense<0.000000e+00> : vector<8x4xf32>
    %454 = tpu.matmul %453, %8, %cst_97 {dimension_numbers = #tpu.dot_dimension_numbers<[1], [0], [0], [1], [0, 0, 1, 1], [], []>} : vector<8x64xbf16>, vector<64x4xbf16>, vector<8x4xf32> -> vector<8x4xf32>
    %455 = vector.broadcast %9 : vector<1x4xf32> to vector<8x4xf32>
    %456 = arith.addf %454, %455 : vector<8x4xf32>
    %457 = vector.extract_strided_slice %456 {offsets = [0, 0], sizes = [8, 3], strides = [1, 1]} : vector<8x4xf32> to vector<8x3xf32>
    %458 = math.tanh %457 : vector<8x3xf32>
    %c0_98 = arith.constant 0 : index
    %c0_99 = arith.constant 0 : index
    %459 = vector.load %arg11[%c0_98, %c0_99] : memref<8x3xf32, #tpu.memory_space<vmem>>, vector<8x3xf32>
    tpu.vector_store %arg11[%c0_98, %c0_99], %458 {strides = array<i32>} : memref<8x3xf32, #tpu.memory_space<vmem>>, vector<8x3xf32>,
    %460 = vector.extract_strided_slice %456 {offsets = [0, 3], sizes = [8, 1], strides = [1, 1]} : vector<8x4xf32> to vector<8x1xf32>
    %461 = arith.negf %460 : vector<8x1xf32>
    %462 = math.exp %461 : vector<8x1xf32>
    %cst_100 = arith.constant 1.000000e+00 : f32
    %463 = vector.broadcast %cst_100 : f32 to vector<8x1xf32>
    %464 = arith.addf %463, %462 : vector<8x1xf32>
    %465 = arith.divf %463, %464 : vector<8x1xf32>
    %cst_101 = arith.constant 3.14159274 : f32
    %466 = vector.broadcast %cst_101 : f32 to vector<8x1xf32>
    %467 = arith.mulf %466, %465 : vector<8x1xf32>
    %468 = vector.shape_cast %467 : vector<8x1xf32> to vector<8x1xf32>
    %469 = vector.broadcast %468 : vector<8x1xf32> to vector<8x3xf32>
    %c0_102 = arith.constant 0 : index
    %c0_103 = arith.constant 0 : index
    %470 = vector.load %arg12[%c0_102, %c0_103] : memref<8x3xf32, #tpu.memory_space<vmem>>, vector<8x3xf32>
    tpu.vector_store %arg12[%c0_102, %c0_103], %469 {strides = array<i32>} : memref<8x3xf32, #tpu.memory_space<vmem>>, vector<8x3xf32>,
    return
  }
}

</mosaic_0001>

<bundles_post_ra>
// kernel: _lambda_.2
= control target key start
LH: loop header
LB: loop body
LE: loop exit
PB: predicated region body
PF: predicated region fallthrough
CT: control target
= control target key end

     0   :  { %vm90_vm0 = vcmask 261120   ;;  %s157_s0 = inlined_call_operand.vmem [shape: bf16[16,768], index: 0, kind: input, shape index: {}]   ;;  %s158_s1 = inlined_call_operand.vmem [shape: f32[3,32], index: 1, kind: input, shape index: {}]   ;;  %s159_s2 = inlined_call_operand.vmem [shape: f32[1,32], index: 2, kind: input, shape index: {}]   ;;  %s160_s3 = inlined_call_operand.vmem [shape: f32[16,32], index: 3, kind: output, shape index: {}]  }
   0x1   :  { %v44_v0 = vld [vmem:[%s157_s0 + $0x8] sm:$0xff]  ;;  %v21_v1 = vld [vmem:[%s157_s0] sm:$0xff]  ;;  %v22_v7 = vld [vmem:[%s157_s0 + $0x18] sm:$0xff] }
   0x2   :  { %v45_v2 = vld [vmem:[%s157_s0 + $0x20] sm:$0xff]  ;;  %v46_v3 = vunpack.c.l.bf16 %v44_v0  ;;  %v47_v4 = vunpack.c.h.bf16 %v44_v0  ;;  %v23_v5 = vunpack.c.l.bf16 %v21_v1  ;;  %v24_v6 = vunpack.c.h.bf16 %v21_v1  ;;  %v68_v8 = vld [vmem:[%s157_s0 + $0x28] sm:$0xff]  ;;  %v67_v13 = vld [vmem:[%s157_s0 + $0x10] sm:$0xff] }
   0x3   :  { %v48_v9 = vunpack.c.l.bf16 %v45_v2  ;;  %v49_v10 = vunpack.c.h.bf16 %v45_v2  ;;  %v25_v11 = vunpack.c.l.bf16 %v22_v7  ;;  %v26_v12 = vunpack.c.h.bf16 %v22_v7  ;;  %v98_v25 = vld [vmem:[%s158_s1] ss:$0 sm:$0xff]  ;;  %v99_v33 = vld [vmem:[%s158_s1 + $0x1] ss:$0 sm:$0xff]  ;;  %v100_v39 = vld [vmem:[%s158_s1 + $0x2] ss:$0 sm:$0xff] }
   0x4   :  { %v50_v14 = vadd.f32 %v47_v4, %v46_v3  ;;  %v27_v15 = vadd.f32 %v24_v6, %v23_v5  ;;  %v71_v16 = vunpack.c.l.bf16 %v68_v8  ;;  %v72_v17 = vunpack.c.h.bf16 %v68_v8  ;;  %v97_v30 = vld [vmem:[%s159_s2] ss:$0 sm:$0xff] }
   0x5   :  { %v53_v18 = vadd.f32 %v49_v10, %v48_v9  ;;  %v30_v19 = vadd.f32 %v26_v12, %v25_v11  ;;  %v69_v20 = vunpack.c.l.bf16 %v67_v13  ;;  %v70_v21 = vunpack.c.h.bf16 %v67_v13 }
   0x6   :  { %51 = vadd.xlane.f32.xlu1 %v50_v14  ;;  %28 = vadd.xlane.f32.xlu0 %v27_v15  ;;  %v76_v22 = vadd.f32 %v72_v17, %v71_v16 }
   0x7   :  { %v73_v23 = vadd.f32 %v70_v21, %v69_v20 }
   0xa   :  { %54 = vadd.xlane.f32.xlu1 %v53_v18  ;;  %31 = vadd.xlane.f32.xlu0 %v30_v19 }
   0xe   :  { %77 = vadd.xlane.f32.xlu1 %v76_v22  ;;  %74 = vadd.xlane.f32.xlu0 %v73_v23 }
  0x93   :  { %v52_v24 = vpop.xlane.xlu1 %51  ;;  %v29_v26 = vpop.xlane.xlu0 %28 }
  0x94   :  { %v33_v27 = vmul.f32 0.00390625, %v29_v26  ;;  %v56_v29 = vmul.f32 0.00390625, %v52_v24 }
  0x96   :  { %v40_v28 = vmul.f32 %v98_v25, %v33_v27  ;;  %v63_v38 = vmul.f32 %v99_v33, %v56_v29 }
  0x97   :  { %v55_v31 = vpop.xlane.xlu1 %54  ;;  %v32_v32 = vpop.xlane.xlu0 %31 }
  0x98   :  { %v57_v34 = vmul.f32 0.00390625, %v55_v31  ;;  %v34_v35 = vmul.f32 0.00390625, %v32_v32  ;;  %v42_v36 = vadd.f32 %v97_v30, %v40_v28 }
  0x9a   :  { %v41_v37 = vmul.f32 %v98_v25, %v34_v35  ;;  %v64_v42 = vmul.f32 %v99_v33, %v57_v34  ;;  %v65_v48 = vadd.f32 %v63_v38, %v42_v36 }
  0x9b   :  { %v78_v40 = vpop.xlane.xlu1 %77  ;;  %v75_v41 = vpop.xlane.xlu0 %74 }
  0x9c   :  { %v43_v43 = vadd.f32 %v97_v30, %v41_v37  ;;  %v80_v44 = vmul.f32 0.00390625, %v78_v40  ;;  %v79_v45 = vmul.f32 0.00390625, %v75_v41 }
  0x9e   :  { %v66_v46 = vadd.f32 %v64_v42, %v43_v43  ;;  %v87_v47 = vmul.f32 %v100_v39, %v80_v44  ;;  %v86_v49 = vmul.f32 %v100_v39, %v79_v45 }
  0xa0   :  { %v89_v50 = vadd.f32 %v87_v47, %v66_v46  ;;  %v88_v51 = vadd.f32 %v86_v49, %v65_v48 }
  0xa2   :  { %92 = vst.msk [vmem:[%s160_s3 + $0x8] sm:$0xff] %vm90_vm0, %v89_v50  ;;  %91 = vst.msk [vmem:[%s160_s3] sm:$0xff] %vm90_vm0, %v88_v51 }

// kernel: _lambda_.3
= control target key start
LH: loop header
LB: loop body
LE: loop exit
PB: predicated region body
PF: predicated region fallthrough
CT: control target
= control target key end

     0   :  { %v2109_v1 = vmov 0   ;;  %vm137_vm0 = vcmask 261120   ;;  %v89_v13 = vlaneseq  ;;  %vm342_vm1 = vcmask 257024   ;;  %s2606_s1 = inlined_call_operand.vmem [shape: bf16[32,256], index: 1, kind: input, shape index: {}]   ;;  %s2607_s2 = inlined_call_operand.vmem [shape: bf16[32,256], index: 2, kind: input, shape index: {}]   ;;  %s2608_s0 = inlined_call_operand.vmem [shape: bf16[56,32], index: 0, kind: input, shape index: {}]   ;;  %s2609_s3 = inlined_call_operand.vmem [shape: f32[1,256], index: 3, kind: input, shape index: {}]   ;;  %s2610_s4 = inlined_call_operand.vmem [shape: bf16[64,128], index: 4, kind: input, shape index: {}]   ;;  %s2611_s5 = inlined_call_operand.vmem [shape: bf16[64,128], index: 5, kind: input, shape index: {}]   ;;  %s2612_s8 = inlined_call_operand.vmem [shape: bf16[32,256], index: 8, kind: input, shape index: {}]   ;;  %s2613_s6 = inlined_call_operand.vmem [shape: f32[1,128], index: 6, kind: input, shape index: {}]   ;;  %s2614_s7 = inlined_call_operand.vmem [shape: f32[1,128], index: 7, kind: input, shape index: {}]   ;;  %s2615_s9 = inlined_call_operand.vmem [shape: bf16[64,4], index: 9, kind: input, shape index: {}]   ;;  %s2616_s10 = inlined_call_operand.vmem [shape: f32[1,4], index: 10, kind: input, shape index: {}]   ;;  %s2617_s11 = inlined_call_operand.vmem [shape: f32[8,3], index: 11, kind: output, shape index: {0}]   ;;  %s2618_s12 = inlined_call_operand.vmem [shape: f32[8,3], index: 12, kind: output, shape index: {1}]  }
   0x1   :  { %v1889_v0 = vld [vmem:[%s2606_s1 + $0x4] ss:$8 sps:$4 sm:$0xff]   ;;  %182 = vmatprep.mubr.bf16.mxu0 %v2109_v1  ;;  %276 = vmatprep.mubr.bf16.mxu1 %v2109_v1  ;;  %v1891_v2 = vld [vmem:[%s2606_s1] ss:$8 sps:$4 sm:$0xff]   ;;  %v1895_v5 = vld [vmem:[%s2606_s1 + $0x14] ss:$8 sps:$4 sm:$0xff]  }
   0x2   :  { %150 = vmatprep.subr.bf16.mxu0 %v1889_v0  ;;  %v2191_v3 = vld [vmem:[%s2607_s2 + $0x4] ss:$8 sps:$4 sm:$0xff]   ;;  %v2196_v4 = vld [vmem:[%s2607_s2] ss:$8 sps:$4 sm:$0xff]   ;;  %v1897_v6 = vld [vmem:[%s2606_s1 + $0x10] ss:$8 sps:$4 sm:$0xff]  }
   0x3   :  { %151 = vmatpush1.bf16.msra.mxu0 %v1891_v2  ;;  %244 = vmatprep.subr.bf16.mxu1 %v2191_v3  ;;  %v2208_v7 = vld [vmem:[%s2607_s2 + $0x14] ss:$8 sps:$4 sm:$0xff]   ;;  %v2214_v8 = vld [vmem:[%s2607_s2 + $0x10] ss:$8 sps:$4 sm:$0xff]   ;;  %v1901_v9 = vld [vmem:[%s2608_s0] sm:$0xff]   ;;  %v90_v14 = vshrl.u32 %v89_v13, 7 }
   0x4   :  { %245 = vmatpush1.bf16.msra.mxu1 %v2196_v4  ;;  %152 = vmatprep.subr.bf16.mxu0 %v1895_v5  ;;  %v1902_v10 = vld [vmem:[%s2608_s0 + $0x8] sm:$0xff]   ;;  %v1903_v11 = vld [vmem:[%s2608_s0 + $0x10] sm:$0xff]   ;;  %v1904_v12 = vld [vmem:[%s2608_s0 + $0x18] ss:$0 sps:$4 sm:$0xff]   ;;  %s2110_s0 = smov 64   ;;  %vm349_vm2 = vcmask 519424  }
   0x5   :  { %246 = vmatprep.subr.bf16.mxu1 %v2208_v7  ;;  %v91_v15 = vsub.s32 0, %v90_v14  ;;  %v49_v16 = vld [vmem:[%s2609_s3] sm:$0x3]  ;;  %v95_v17 = vsub.s32 1, %v90_v14  ;;  %s2111_s3 = smov 32   ;;  %vm1058_vm3 = vcmask 523264  }
   0x6   :  { %vm2113_vm4 = vmmov 0   ;;  %vm1702_vm5 = vcmask 23552  }
   0x7   :  { %153 = vmatpush1.bf16.msra.mxu0 %v1897_v6  ;;  %v92_v18 = vrot.slane %v49_v16, %v91_v15  ;;  %v96_v19 = vrot.slane %v49_v16, %v95_v17 }
   0x8   :  { %686 = vmatprep.subr.bf16.mxu0 %v2191_v3  ;;  %247 = vmatpush1.bf16.msra.mxu1 %v2214_v8 }
   0x9   :  { %356 = vmatprep.subr.bf16.mxu1 %v2191_v3 }
   0xa   :  { %1733 = vmatmul.mubr.msk.bf16.vlgmr.msra.gmra.mrb[0].mxu0 %vm137_vm0, %v1901_v9 }
   0xb   :  { %192 = vmatprep.mubr.bf16.mxu0 %v2109_v1  ;;  %687 = vmatpush1.bf16.msra.mxu0 %v2196_v4 }
   0xc   :  { %277 = vmatmul.mubr.bf16.vlgmr.msra.gmra.mrb[0].mxu1 %v2109_v1  ;;  %688 = vmatprep.subr.bf16.mxu0 %v2208_v7 }
   0xd   :  { %357 = vmatpush1.bf16.msra.mxu1 %v2196_v4  ;;  %388 = vmatprep.mubr.bf16.mxu1 %v2109_v1 }
   0xe   :  { %358 = vmatprep.subr.bf16.mxu1 %v2208_v7 }
   0xf   :  { %689 = vmatpush1.bf16.msra.mxu0 %v2214_v8 }
  0x10   :  { %906 = vmatprep.subr.bf16.mxu0 %v2191_v3 }
  0x11   :  { %359 = vmatpush1.bf16.msra.mxu1 %v2214_v8 }
  0x12   :  { %1734 = vmatmul.mubr.msk.bf16.gmra.mrb[4].mxu0 %vm137_vm0, %v1902_v10  ;;  %466 = vmatprep.subr.bf16.mxu1 %v2191_v3 }
  0x13   :  { %202 = vmatprep.mubr.bf16.mxu0 %v2109_v1 }
  0x1a   :  { %1735 = vmatmul.mubr.msk.bf16.gmra.mrb[8].mxu0 %vm137_vm0, %v1903_v11 }
  0x1b   :  { %212 = vmatprep.mubr.bf16.mxu0 %v2109_v1 }
  0x22   :  { %1736 = vmatmul.mubr.msk.bf16.gmra.mrb[12].mxu0 %vm137_vm0, %v1904_v12 }
  0x23   :  { %718 = vmatprep.mubr.bf16.mxu0 %v2109_v1 }
  0xdd   :  { %v184_v20 = vpop.f32.mrb[0].mxu0 }
  0xde   :  { %v185_v21 = vadd.f32 %v184_v20, %v92_v18  ;;  %v186_v22 = vpop.f32.mrb[1].mxu0 }
  0xdf   :  { %v2253_v23 = vadd.f32 %v186_v22, %v96_v19  ;;  %v188_v24 = vpop.f32.mrb[2].mxu0  ;;  %v278_v25 = vpop.f32.mrb[0].mxu1 }
  0xe0   :  { %v2255_v26 = vadd.f32 %v188_v24, %v92_v18  ;;  %v285_v27 = vadd.f32 %v278_v25, %v185_v21  ;;  %v190_v28 = vpop.f32.mrb[3].mxu0  ;;  %v280_v29 = vpop.f32.mrb[1].mxu1 }
  0xe1   :  { %v2257_v30 = vadd.f32 %v190_v28, %v96_v19  ;;  %v281_v31 = vpop.f32.mrb[2].mxu1 }
  0xe2   :  { %1927 = vtanh.f32 %v285_v27  ;;  %v282_v32 = vpop.f32.mrb[3].mxu1  ;;  %v1741_v58 = vmul.f32 -1.442695, %v285_v27 }
  0xe5   :  { %v194_v33 = vpop.f32.mrb[4].mxu0 }
  0xe6   :  { %v2259_v34 = vadd.f32 %v194_v33, %v92_v18  ;;  %v196_v35 = vpop.f32.mrb[5].mxu0 }
  0xe7   :  { %v2261_v36 = vadd.f32 %v196_v35, %v96_v19  ;;  %v198_v37 = vpop.f32.mrb[6].mxu0 }
  0xe8   :  { %v2263_v38 = vadd.f32 %v198_v37, %v92_v18  ;;  %v200_v39 = vpop.f32.mrb[7].mxu0 }
  0xe9   :  { %v2265_v40 = vadd.f32 %v200_v39, %v96_v19 }
  0xec   :  { %v1928_v41 = vpop.eup %1927 }
  0xed   :  { %v204_v42 = vpop.f32.mrb[8].mxu0  ;;  %305 = vrot.lane.b32.xlu0 %v1928_v41, %s2110_s0 }
  0xee   :  { %v2268_v43 = vadd.f32 %v204_v42, %v92_v18  ;;  %v206_v44 = vpop.f32.mrb[9].mxu0 }
  0xef   :  { %v2270_v45 = vadd.f32 %v206_v44, %v96_v19  ;;  %v208_v46 = vpop.f32.mrb[10].mxu0 }
  0xf0   :  { %v2272_v47 = vadd.f32 %v208_v46, %v92_v18  ;;  %v210_v48 = vpop.f32.mrb[11].mxu0 }
  0xf1   :  { %v211_v49 = vadd.f32 %v210_v48, %v96_v19 }
  0xf5   :  { %v214_v50 = vpop.f32.mrb[12].mxu0 }
  0xf6   :  { %v2274_v51 = vadd.f32 %v214_v50, %v92_v18  ;;  %v216_v52 = vpop.f32.mrb[13].mxu0 }
  0xf7   :  { %v217_v53 = vadd.f32 %v216_v52, %v96_v19  ;;  %v218_v54 = vpop.f32.mrb[14].mxu0 }
  0xf8   :  { %v219_v55 = vpop.f32.mrb[15].mxu0 }
  0xf9   :  { %v286_v56 = vadd.f32 %v282_v32, %v217_v53 }
  0xfb   :  { %1929 = vtanh.f32 %v286_v56  ;;  %v1742_v61 = vmul.f32 -1.442695, %v286_v56 }
  0xfc   :  { %1931 = vpow2.f32 %v1741_v58 }
 0x105   :  { %v1930_v57 = vpop.eup %1929 }
 0x106   :  { %307 = vrot.lane.b32.xlu0 %v1930_v57, %s2110_s0  ;;  %v1932_v59 = vpop.eup %1931 }
 0x107   :  { %v293_v60 = vadd.f32 1.0, %v1932_v59 }
 0x109   :  { %1933 = vrcp.f32 %v293_v60 }
 0x10a   :  { %1935 = vpow2.f32 %v1742_v61 }
 0x113   :  { %v1934_v62 = vpop.eup %1933 }
 0x114   :  { %v1936_v2 = vpop.eup %1935  ;;  %v301_v11 = vmul.f32 0.0, %v1934_v62 }
 0x115   :  { %v294_v5 = vadd.f32 1.0, %v1936_v2 }
 0x117   :  { %1937 = vrcp.f32 %v294_v5 }
 0x121   :  { %v1938_v6 = vpop.eup %1937 }
 0x122   :  { %v302_v15 = vmul.f32 0.0, %v1938_v6 }
 0x15f   :  { %v306_v63 = vpop.permute.xlu0 %305 }
 0x160   :  { %v311_v0 = vmul.f32 %v1934_v62, %v306_v63 }
 0x162   :  { %315 = vrot.lane.b32.xlu1 %v311_v0, %s2111_s3 }
 0x178   :  { %v308_v9 = vpop.permute.xlu0 %307 }
 0x179   :  { %v312_v10 = vmul.f32 %v1938_v6, %v308_v9 }
 0x17b   :  { %317 = vrot.lane.b32.xlu1 %v312_v10, %s2111_s3 }
 0x1d4   :  { %v316_v12 = vpop.permute.xlu1 %315 }
 0x1d5   :  { %v321_v13 = vadd.f32 %v316_v12, %v301_v11 }
 0x1d7   :  { %1939 = vtanh.f32 %v321_v13 }
 0x1e1   :  { %v1940_v14 = vpop.eup %1939 }
 0x1e2   :  { %327 = vrot.lane.b32.xlu0 %v1940_v14, %s2110_s0 }
 0x1ed   :  { %v318_v16 = vpop.permute.xlu1 %317 }
 0x1ee   :  { %v322_v17 = vadd.f32 %v318_v16, %v302_v15 }
 0x1f0   :  { %1941 = vtanh.f32 %v322_v17 }
 0x1fa   :  { %v1942_v18 = vpop.eup %1941 }
 0x1fb   :  { %329 = vrot.lane.b32.xlu1 %v1942_v18, %s2110_s0 }
 0x254   :  { %v328_v19 = vpop.permute.xlu0 %327 }
 0x255   :  { %v2281_v21 = vmul.f32 %v1934_v62, %v328_v19 }
 0x26d   :  { %v330_v20 = vpop.permute.xlu1 %329 }
 0x26e   :  { %v2283_v22 = vmul.f32 %v1938_v6, %v330_v20 }
 0x270   :  { %v335_v24 = vpack.c.bf16 %v2283_v22, %v2281_v21 }
 0x272   :  { %351 = vrot.lane.b32.xlu0 %v335_v24, %s2111_s3 }
 0x2e4   :  { %v352_v25 = vpop.permute.xlu0 %351 }
 0x2e5   :  { %1745 = vmatmul.mubr.msk.bf16.vlgmr.msra.gmra.mrb[4].mxu1 %vm137_vm0, %v352_v25 }
 0x2e6   :  { %467 = vmatpush1.bf16.msra.mxu1 %v2196_v4  ;;  %498 = vmatprep.mubr.bf16.mxu1 %v2109_v1 }
 0x2e7   :  { %468 = vmatprep.subr.bf16.mxu1 %v2208_v7 }
 0x2ea   :  { %469 = vmatpush1.bf16.msra.mxu1 %v2214_v8 }
 0x2eb   :  { %576 = vmatprep.subr.bf16.mxu1 %v2191_v3 }
 0x3b8   :  { %v390_v27 = vpop.f32.mrb[4].mxu1 }
 0x3b9   :  { %v397_v28 = vadd.f32 %v390_v27, %v2255_v26  ;;  %v392_v29 = vpop.f32.mrb[5].mxu1 }
 0x3ba   :  { %v393_v31 = vpop.f32.mrb[6].mxu1 }
 0x3bb   :  { %1943 = vtanh.f32 %v397_v28  ;;  %v394_v32 = vpop.f32.mrb[7].mxu1  ;;  %v1746_v39 = vmul.f32 -1.442695, %v397_v28 }
 0x3bc   :  { %v398_v33 = vadd.f32 %v394_v32, %v211_v49 }
 0x3be   :  { %1945 = vtanh.f32 %v398_v33  ;;  %v1747_v41 = vmul.f32 -1.442695, %v398_v33 }
 0x3bf   :  { %1947 = vpow2.f32 %v1746_v39 }
 0x3c0   :  { %1949 = vpow2.f32 %v1747_v41 }
 0x3c5   :  { %v1944_v35 = vpop.eup %1943 }
 0x3c6   :  { %417 = vrot.lane.b32.xlu1 %v1944_v35, %s2110_s0 }
 0x3c8   :  { %v1946_v37 = vpop.eup %1945 }
 0x3c9   :  { %419 = vrot.lane.b32.xlu0 %v1946_v37, %s2110_s0  ;;  %v1948_v42 = vpop.eup %1947 }
 0x3ca   :  { %v1950_v44 = vpop.eup %1949  ;;  %v405_v46 = vadd.f32 1.0, %v1948_v42 }
 0x3cb   :  { %v406_v26 = vadd.f32 1.0, %v1950_v44 }
 0x3cc   :  { %1951 = vrcp.f32 %v405_v46 }
 0x3cd   :  { %1953 = vrcp.f32 %v406_v26 }
 0x3d6   :  { %v1952_v48 = vpop.eup %1951 }
 0x3d7   :  { %v1954_v52 = vpop.eup %1953  ;;  %v413_v55 = vmul.f32 %v1952_v48, %v321_v13 }
 0x3d8   :  { %v414_v58 = vmul.f32 %v1954_v52, %v322_v17 }
 0x438   :  { %v418_v50 = vpop.permute.xlu1 %417 }
 0x439   :  { %v423_v49 = vmul.f32 %v1952_v48, %v418_v50 }
 0x43b   :  { %427 = vrot.lane.b32.xlu1 %v423_v49, %s2111_s3  ;;  %v420_v53 = vpop.permute.xlu0 %419 }
 0x43c   :  { %v424_v54 = vmul.f32 %v1954_v52, %v420_v53 }
 0x43e   :  { %429 = vrot.lane.b32.xlu0 %v424_v54, %s2111_s3 }
 0x4ad   :  { %v428_v56 = vpop.permute.xlu1 %427 }
 0x4ae   :  { %v433_v57 = vadd.f32 %v428_v56, %v413_v55 }
 0x4b0   :  { %1955 = vtanh.f32 %v433_v57  ;;  %v430_v59 = vpop.permute.xlu0 %429 }
 0x4b1   :  { %v434_v60 = vadd.f32 %v430_v59, %v414_v58 }
 0x4b3   :  { %1957 = vtanh.f32 %v434_v60 }
 0x4ba   :  { %v1956_v61 = vpop.eup %1955 }
 0x4bb   :  { %439 = vrot.lane.b32.xlu1 %v1956_v61, %s2110_s0 }
 0x4bd   :  { %v1958_v62 = vpop.eup %1957 }
 0x4be   :  { %441 = vrot.lane.b32.xlu0 %v1958_v62, %s2110_s0 }
 0x52d   :  { %v440_v63 = vpop.permute.xlu1 %439 }
 0x52e   :  { %v2301_v2 = vmul.f32 %v1952_v48, %v440_v63 }
 0x530   :  { %v442_v0 = vpop.permute.xlu0 %441 }
 0x531   :  { %v2303_v5 = vmul.f32 %v1954_v52, %v442_v0 }
 0x533   :  { %v447_v6 = vpack.c.bf16 %v2303_v5, %v2301_v2 }
 0x535   :  { %461 = vrot.lane.b32.xlu1 %v447_v6, %s2111_s3 }
 0x5a7   :  { %v462_v9 = vpop.permute.xlu1 %461 }
 0x5a8   :  { %1750 = vmatmul.mubr.msk.bf16.vlgmr.msra.gmra.mrb[8].mxu1 %vm137_vm0, %v462_v9 }
 0x5a9   :  { %577 = vmatpush1.bf16.msra.mxu1 %v2196_v4  ;;  %608 = vmatprep.mubr.bf16.mxu1 %v2109_v1 }
 0x5aa   :  { %578 = vmatprep.subr.bf16.mxu1 %v2208_v7 }
 0x5ad   :  { %579 = vmatpush1.bf16.msra.mxu1 %v2214_v8 }
 0x5ae   :  { %796 = vmatprep.subr.bf16.mxu1 %v2191_v3 }
 0x67b   :  { %v500_v10 = vpop.f32.mrb[8].mxu1 }
 0x67c   :  { %v507_v11 = vadd.f32 %v500_v10, %v2259_v34  ;;  %v502_v12 = vpop.f32.mrb[9].mxu1 }
 0x67d   :  { %v503_v13 = vpop.f32.mrb[10].mxu1 }
 0x67e   :  { %1959 = vtanh.f32 %v507_v11  ;;  %v504_v14 = vpop.f32.mrb[11].mxu1  ;;  %v1751_v18 = vmul.f32 -1.442695, %v507_v11 }
 0x67f   :  { %v508_v15 = vadd.f32 %v504_v14, %v2270_v45 }
 0x681   :  { %1961 = vtanh.f32 %v508_v15  ;;  %v1752_v19 = vmul.f32 -1.442695, %v508_v15 }
 0x682   :  { %1963 = vpow2.f32 %v1751_v18 }
 0x683   :  { %1965 = vpow2.f32 %v1752_v19 }
 0x688   :  { %v1960_v16 = vpop.eup %1959 }
 0x689   :  { %527 = vrot.lane.b32.xlu0 %v1960_v16, %s2110_s0 }
 0x68b   :  { %v1962_v17 = vpop.eup %1961 }
 0x68c   :  { %529 = vrot.lane.b32.xlu1 %v1962_v17, %s2110_s0  ;;  %v1964_v3 = vpop.eup %1963 }
 0x68d   :  { %v1966_v20 = vpop.eup %1965  ;;  %v515_v34 = vadd.f32 1.0, %v1964_v3 }
 0x68e   :  { %v516_v24 = vadd.f32 1.0, %v1966_v20 }
 0x68f   :  { %1967 = vrcp.f32 %v515_v34 }
 0x690   :  { %1969 = vrcp.f32 %v516_v24 }
 0x699   :  { %v1968_v25 = vpop.eup %1967 }
 0x69a   :  { %v1970_v28 = vpop.eup %1969  ;;  %v523_v32 = vmul.f32 %v1968_v25, %v433_v57 }
 0x69b   :  { %v524_v37 = vmul.f32 %v1970_v28, %v434_v60 }
 0x6fb   :  { %v528_v27 = vpop.permute.xlu0 %527 }
 0x6fc   :  { %v533_v45 = vmul.f32 %v1968_v25, %v528_v27 }
 0x6fe   :  { %537 = vrot.lane.b32.xlu0 %v533_v45, %s2111_s3  ;;  %v530_v29 = vpop.permute.xlu1 %529 }
 0x6ff   :  { %v534_v31 = vmul.f32 %v1970_v28, %v530_v29 }
 0x701   :  { %539 = vrot.lane.b32.xlu1 %v534_v31, %s2111_s3 }
 0x770   :  { %v538_v33 = vpop.permute.xlu0 %537 }
 0x771   :  { %v543_v35 = vadd.f32 %v538_v33, %v523_v32 }
 0x773   :  { %1971 = vtanh.f32 %v543_v35  ;;  %v540_v39 = vpop.permute.xlu1 %539 }
 0x774   :  { %v544_v41 = vadd.f32 %v540_v39, %v524_v37 }
 0x776   :  { %1973 = vtanh.f32 %v544_v41 }
 0x77d   :  { %v1972_v42 = vpop.eup %1971 }
 0x77e   :  { %549 = vrot.lane.b32.xlu0 %v1972_v42, %s2110_s0 }
 0x780   :  { %v1974_v44 = vpop.eup %1973 }
 0x781   :  { %551 = vrot.lane.b32.xlu1 %v1974_v44, %s2110_s0 }
 0x7f0   :  { %v550_v46 = vpop.permute.xlu0 %549 }
 0x7f1   :  { %v2322_v48 = vmul.f32 %v1968_v25, %v550_v46 }
 0x7f3   :  { %v552_v26 = vpop.permute.xlu1 %551 }
 0x7f4   :  { %v2324_v50 = vmul.f32 %v1970_v28, %v552_v26 }
 0x7f6   :  { %v557_v49 = vpack.c.bf16 %v2324_v50, %v2322_v48 }
 0x7f8   :  { %571 = vrot.lane.b32.xlu0 %v557_v49, %s2111_s3 }
 0x86a   :  { %v572_v52 = vpop.permute.xlu0 %571 }
 0x86b   :  { %1755 = vmatmul.mubr.msk.bf16.vlgmr.msra.gmra.mrb[12].mxu1 %vm137_vm0, %v572_v52 }
 0x86c   :  { %797 = vmatpush1.bf16.msra.mxu1 %v2196_v4  ;;  %828 = vmatprep.mubr.bf16.mxu1 %v2109_v1 }
 0x86d   :  { %798 = vmatprep.subr.bf16.mxu1 %v2208_v7 }
 0x870   :  { %799 = vmatpush1.bf16.msra.mxu1 %v2214_v8 }
 0x93e   :  { %v610_v53 = vpop.f32.mrb[12].mxu1 }
 0x93f   :  { %v617_v54 = vadd.f32 %v610_v53, %v2263_v38  ;;  %v612_v55 = vpop.f32.mrb[13].mxu1 }
 0x940   :  { %v613_v56 = vpop.f32.mrb[14].mxu1 }
 0x941   :  { %1975 = vtanh.f32 %v617_v54  ;;  %v614_v57 = vpop.f32.mrb[15].mxu1  ;;  %v1756_v61 = vmul.f32 -1.442695, %v617_v54 }
 0x942   :  { %v618_v58 = vadd.f32 %v614_v57, %v2265_v40 }
 0x944   :  { %1977 = vtanh.f32 %v618_v58  ;;  %v1757_v62 = vmul.f32 -1.442695, %v618_v58 }
 0x945   :  { %1979 = vpow2.f32 %v1756_v61 }
 0x946   :  { %1981 = vpow2.f32 %v1757_v62 }
 0x94b   :  { %v1976_v59 = vpop.eup %1975 }
 0x94c   :  { %637 = vrot.lane.b32.xlu1 %v1976_v59, %s2110_s0 }
 0x94e   :  { %v1978_v60 = vpop.eup %1977 }
 0x94f   :  { %639 = vrot.lane.b32.xlu0 %v1978_v60, %s2110_s0  ;;  %v1980_v63 = vpop.eup %1979 }
 0x950   :  { %v1982_v0 = vpop.eup %1981  ;;  %v625_v38 = vadd.f32 1.0, %v1980_v63 }
 0x951   :  { %v626_v6 = vadd.f32 1.0, %v1982_v0 }
 0x952   :  { %1983 = vrcp.f32 %v625_v38 }
 0x953   :  { %1985 = vrcp.f32 %v626_v6 }
 0x95c   :  { %v1984_v9 = vpop.eup %1983 }
 0x95d   :  { %v1986_v11 = vpop.eup %1985  ;;  %v633_v14 = vmul.f32 %v1984_v9, %v543_v35 }
 0x95e   :  { %v634_v17 = vmul.f32 %v1986_v11, %v544_v41 }
 0x9be   :  { %v638_v10 = vpop.permute.xlu1 %637 }
 0x9bf   :  { %v643_v40 = vmul.f32 %v1984_v9, %v638_v10 }
 0x9c1   :  { %647 = vrot.lane.b32.xlu1 %v643_v40, %s2111_s3  ;;  %v640_v12 = vpop.permute.xlu0 %639 }
 0x9c2   :  { %v644_v13 = vmul.f32 %v1986_v11, %v640_v12 }
 0x9c4   :  { %649 = vrot.lane.b32.xlu0 %v644_v13, %s2111_s3 }
 0xa33   :  { %v648_v15 = vpop.permute.xlu1 %647 }
 0xa34   :  { %v653_v16 = vadd.f32 %v648_v15, %v633_v14 }
 0xa36   :  { %1987 = vtanh.f32 %v653_v16  ;;  %v650_v18 = vpop.permute.xlu0 %649 }
 0xa37   :  { %v654_v19 = vadd.f32 %v650_v18, %v634_v17 }
 0xa39   :  { %1989 = vtanh.f32 %v654_v19 }
 0xa40   :  { %v1988_v3 = vpop.eup %1987 }
 0xa41   :  { %659 = vrot.lane.b32.xlu1 %v1988_v3, %s2110_s0 }
 0xa43   :  { %v1990_v20 = vpop.eup %1989 }
 0xa44   :  { %661 = vrot.lane.b32.xlu0 %v1990_v20, %s2110_s0 }
 0xab3   :  { %v660_v34 = vpop.permute.xlu1 %659 }
 0xab4   :  { %v2342_v25 = vmul.f32 %v1984_v9, %v660_v34 }
 0xab6   :  { %v662_v24 = vpop.permute.xlu0 %661 }
 0xab7   :  { %v2344_v27 = vmul.f32 %v1986_v11, %v662_v24 }
 0xab9   :  { %v667_v45 = vpack.c.bf16 %v2344_v27, %v2342_v25 }
 0xabb   :  { %681 = vrot.lane.b32.xlu1 %v667_v45, %s2111_s3 }
 0xb2d   :  { %v682_v28 = vpop.permute.xlu1 %681 }
 0xb2e   :  { %1760 = vmatmul.mubr.msk.bf16.vlgmr.msra.gmra.mrb[16].mxu0 %vm137_vm0, %v682_v28 }
 0xb2f   :  { %907 = vmatpush1.bf16.msra.mxu0 %v2196_v4  ;;  %938 = vmatprep.mubr.bf16.mxu0 %v2109_v1 }
 0xb30   :  { %908 = vmatprep.subr.bf16.mxu0 %v2208_v7 }
 0xb33   :  { %909 = vmatpush1.bf16.msra.mxu0 %v2214_v8 }
 0xc01   :  { %v720_v29 = vpop.f32.mrb[16].mxu0 }
 0xc02   :  { %v727_v31 = vadd.f32 %v720_v29, %v2268_v43  ;;  %v722_v32 = vpop.f32.mrb[17].mxu0 }
 0xc03   :  { %v723_v33 = vpop.f32.mrb[18].mxu0 }
 0xc04   :  { %1991 = vtanh.f32 %v727_v31  ;;  %v724_v35 = vpop.f32.mrb[19].mxu0  ;;  %v1761_v41 = vmul.f32 -1.442695, %v727_v31 }
 0xc05   :  { %v728_v37 = vadd.f32 %v724_v35, %v2261_v36 }
 0xc07   :  { %1993 = vtanh.f32 %v728_v37  ;;  %v1762_v7 = vmul.f32 -1.442695, %v728_v37 }
 0xc08   :  { %1995 = vpow2.f32 %v1761_v41 }
 0xc09   :  { %1997 = vpow2.f32 %v1762_v7 }
 0xc0e   :  { %v1992_v39 = vpop.eup %1991 }
 0xc0f   :  { %747 = vrot.lane.b32.xlu0 %v1992_v39, %s2110_s0 }
 0xc11   :  { %v1994_v4 = vpop.eup %1993 }
 0xc12   :  { %749 = vrot.lane.b32.xlu1 %v1994_v4, %s2110_s0  ;;  %v1996_v8 = vpop.eup %1995 }
 0xc13   :  { %v1998_v42 = vpop.eup %1997  ;;  %v735_v43 = vadd.f32 1.0, %v1996_v8 }
 0xc14   :  { %v736_v44 = vadd.f32 1.0, %v1998_v42 }
 0xc15   :  { %1999 = vrcp.f32 %v735_v43 }
 0xc16   :  { %2001 = vrcp.f32 %v736_v44 }
 0xc1f   :  { %v2000_v46 = vpop.eup %1999 }
 0xc20   :  { %v2002_v49 = vpop.eup %2001  ;;  %v743_v54 = vmul.f32 %v2000_v46, %v653_v16 }
 0xc21   :  { %v744_v57 = vmul.f32 %v2002_v49, %v654_v19 }
 0xc81   :  { %v748_v26 = vpop.permute.xlu0 %747 }
 0xc82   :  { %v753_v36 = vmul.f32 %v2000_v46, %v748_v26 }
 0xc84   :  { %757 = vrot.lane.b32.xlu0 %v753_v36, %s2111_s3  ;;  %v750_v52 = vpop.permute.xlu1 %749 }
 0xc85   :  { %v754_v53 = vmul.f32 %v2002_v49, %v750_v52 }
 0xc87   :  { %759 = vrot.lane.b32.xlu1 %v754_v53, %s2111_s3 }
 0xcf6   :  { %v758_v55 = vpop.permute.xlu0 %757 }
 0xcf7   :  { %v763_v56 = vadd.f32 %v758_v55, %v743_v54 }
 0xcf9   :  { %2003 = vtanh.f32 %v763_v56  ;;  %v760_v58 = vpop.permute.xlu1 %759 }
 0xcfa   :  { %v764_v59 = vadd.f32 %v760_v58, %v744_v57 }
 0xcfc   :  { %2005 = vtanh.f32 %v764_v59 }
 0xd03   :  { %v2004_v60 = vpop.eup %2003 }
 0xd04   :  { %769 = vrot.lane.b32.xlu0 %v2004_v60, %s2110_s0 }
 0xd06   :  { %v2006_v61 = vpop.eup %2005 }
 0xd07   :  { %771 = vrot.lane.b32.xlu1 %v2006_v61, %s2110_s0 }
 0xd76   :  { %v770_v62 = vpop.permute.xlu0 %769 }
 0xd77   :  { %v2362_v0 = vmul.f32 %v2000_v46, %v770_v62 }
 0xd79   :  { %v772_v63 = vpop.permute.xlu1 %771 }
 0xd7a   :  { %v2364_v38 = vmul.f32 %v2002_v49, %v772_v63 }
 0xd7c   :  { %v777_v6 = vpack.c.bf16 %v2364_v38, %v2362_v0 }
 0xd7e   :  { %791 = vrot.lane.b32.xlu0 %v777_v6, %s2111_s3 }
 0xdf0   :  { %v792_v9 = vpop.permute.xlu0 %791 }
 0xdf1   :  { %1765 = vmatmul.mubr.msk.bf16.vlgmr.msra.gmra.mrb[16].mxu1 %vm137_vm0, %v792_v9 }
 0xec4   :  { %v830_v10 = vpop.f32.mrb[16].mxu1 }
 0xec5   :  { %v837_v40 = vadd.f32 %v830_v10, %v2272_v47  ;;  %v832_v11 = vpop.f32.mrb[17].mxu1 }
 0xec6   :  { %v833_v12 = vpop.f32.mrb[18].mxu1 }
 0xec7   :  { %2007 = vtanh.f32 %v837_v40  ;;  %v834_v13 = vpop.f32.mrb[19].mxu1  ;;  %v1766_v17 = vmul.f32 -1.442695, %v837_v40 }
 0xec8   :  { %v838_v14 = vadd.f32 %v834_v13, %v2257_v30 }
 0xeca   :  { %2009 = vtanh.f32 %v838_v14  ;;  %v1767_v18 = vmul.f32 -1.442695, %v838_v14 }
 0xecb   :  { %2011 = vpow2.f32 %v1766_v17 }
 0xecc   :  { %2013 = vpow2.f32 %v1767_v18  ;;  %v1817_v18 = vpack.c.bf16 %v2301_v2, %v2301_v2  ;;  %v1824_v2 = vpack.c.bf16 %v2364_v38, %v2364_v38  ;;  %v1906_v38 = vld [vmem:[%s2610_s4 + $0x8] sm:$0xff]  }
 0xed1   :  { %v2008_v15 = vpop.eup %2007 }
 0xed2   :  { %857 = vrot.lane.b32.xlu1 %v2008_v15, %s2110_s0 }
 0xed4   :  { %v2010_v16 = vpop.eup %2009 }
 0xed5   :  { %859 = vrot.lane.b32.xlu0 %v2010_v16, %s2110_s0  ;;  %v2012_v19 = vpop.eup %2011 }
 0xed6   :  { %v2014_v3 = vpop.eup %2013  ;;  %v845_v47 = vadd.f32 1.0, %v2012_v19  ;;  %v1815_v19 = vpack.c.bf16 %v2281_v21, %v2281_v21  ;;  %v1816_v21 = vpack.c.bf16 %v2283_v22, %v2283_v22  ;;  %v1820_v22 = vpack.c.bf16 %v2324_v50, %v2324_v50  ;;  %v1908_v50 = vld [vmem:[%s2611_s5] sm:$0xff]  }
 0xed7   :  { %v846_v20 = vadd.f32 1.0, %v2014_v3  ;;  %v1821_v3 = vpack.c.bf16 %v2342_v25, %v2342_v25  ;;  %v1822_v25 = vpack.c.bf16 %v2344_v27, %v2344_v27  ;;  %v1818_v27 = vpack.c.bf16 %v2303_v5, %v2303_v5  ;;  %1858 = vmatprep.subr.bf16.mxu0 %v1908_v50  ;;  %v1910_v5 = vld [vmem:[%s2611_s5 + $0x8] sm:$0xff]  }
 0xed8   :  { %2015 = vrcp.f32 %v845_v47  ;;  %v1819_v47 = vpack.c.bf16 %v2322_v48, %v2322_v48  ;;  %v1905_v48 = vld [vmem:[%s2610_s4] sm:$0xff]  }
 0xed9   :  { %2017 = vrcp.f32 %v846_v20  ;;  %1846 = vmatprep.subr.bf16.mxu1 %v1905_v48 }
 0xeda   :  { %1847 = vmatpush3.bf16.msra.mxu1 %v1905_v48 }
 0xedb   :  { %1848 = vmatprep.subr.bf16.mxu1 %v1906_v38 }
 0xede   :  { %1849 = vmatpush3.bf16.msra.mxu1 %v1906_v38 }
 0xee2   :  { %v2016_v34 = vpop.eup %2015 }
 0xee3   :  { %v2018_v45 = vpop.eup %2017  ;;  %v853_v31 = vmul.f32 %v2016_v34, %v763_v56 }
 0xee4   :  { %v854_v35 = vmul.f32 %v2018_v45, %v764_v59 }
 0xf44   :  { %v858_v24 = vpop.permute.xlu1 %857 }
 0xf45   :  { %v863_v30 = vmul.f32 %v2016_v34, %v858_v24  ;;  %v1907_v24 = vld [vmem:[%s2610_s4 + $0x10] sm:$0xff]  }
 0xf46   :  { %1850 = vmatprep.subr.bf16.mxu1 %v1907_v24 }
 0xf47   :  { %867 = vrot.lane.b32.xlu1 %v863_v30, %s2111_s3  ;;  %v860_v28 = vpop.permute.xlu0 %859  ;;  %1851 = vmatpush3.bf16.msra.mxu1 %v1907_v24  ;;  %v1909_v30 = vld [vmem:[%s2610_s4 + $0x18] sm:$0xff]  }
 0xf48   :  { %v864_v29 = vmul.f32 %v2018_v45, %v860_v28  ;;  %1852 = vmatprep.subr.bf16.mxu1 %v1909_v30  ;;  %v1912_v28 = vld [vmem:[%s2611_s5 + $0x10] sm:$0xff]  }
 0xf4a   :  { %869 = vrot.lane.b32.xlu0 %v864_v29, %s2111_s3 }
 0xf4b   :  { %1853 = vmatpush3.bf16.msra.mxu1 %v1909_v30 }
 0xfb9   :  { %v868_v32 = vpop.permute.xlu1 %867 }
 0xfba   :  { %v873_v33 = vadd.f32 %v868_v32, %v853_v31  ;;  %v2454_v31 = vld [vmem:[%s2612_s8 + $0x4] ss:$8 sps:$4 sm:$0xff]  }
 0xfbb   :  { %1227 = vmatprep.subr.bf16.mxu1 %v2454_v31 }
 0xfbc   :  { %2019 = vtanh.f32 %v873_v33  ;;  %v870_v37 = vpop.permute.xlu0 %869 }
 0xfbd   :  { %v874_v39 = vadd.f32 %v870_v37, %v854_v35  ;;  %v1917_v37 = vld [vmem:[%s2611_s5 + $0x18] sm:$0xff]  }
 0xfbf   :  { %2021 = vtanh.f32 %v874_v39 }
 0xfc6   :  { %v2020_v4 = vpop.eup %2019 }
 0xfc7   :  { %879 = vrot.lane.b32.xlu1 %v2020_v4, %s2110_s0 }
 0xfc9   :  { %v2022_v41 = vpop.eup %2021 }
 0xfca   :  { %881 = vrot.lane.b32.xlu0 %v2022_v41, %s2110_s0  ;;  %v1823_v41 = vpack.c.bf16 %v2362_v0, %v2362_v0 }
0x1039   :  { %v880_v7 = vpop.permute.xlu1 %879 }
0x103a   :  { %v2378_v42 = vmul.f32 %v2016_v34, %v880_v7 }
0x103c   :  { %v882_v8 = vpop.permute.xlu0 %881  ;;  %v1825_v34 = vpack.c.bf16 %v2378_v42, %v2378_v42 }
0x103d   :  { %v886_v43 = vmul.f32 %v2018_v45, %v882_v8 }
0x103f   :  { %v887_v44 = vpack.c.bf16 %v886_v43, %v2378_v42  ;;  %v1826_v20 = vpack.c.bf16 %v886_v43, %v886_v43 }
0x1041   :  { %901 = vrot.lane.b32.xlu1 %v887_v44, %s2111_s3 }
0x10b3   :  { %v902_v46 = vpop.permute.xlu1 %901 }
0x10b4   :  { %1770 = vmatmul.mubr.msk.bf16.vlgmr.msra.gmra.mrb[20].mxu0 %vm137_vm0, %v902_v46 }
0x10b5   :  { %1859 = vmatpush3.bf16.msra.mxu0 %v1908_v50 }
0x10b6   :  { %1860 = vmatprep.subr.bf16.mxu0 %v1910_v5 }
0x10b9   :  { %1861 = vmatpush3.bf16.msra.mxu0 %v1910_v5 }
0x10ba   :  { %1862 = vmatprep.subr.bf16.mxu0 %v1912_v28 }
0x10bd   :  { %1863 = vmatpush3.bf16.msra.mxu0 %v1912_v28 }
0x10be   :  { %1864 = vmatprep.subr.bf16.mxu0 %v1917_v37 }
0x10c1   :  { %1865 = vmatpush3.bf16.msra.mxu0 %v1917_v37 }
0x10c2   :  { %1330 = vmatprep.subr.bf16.mxu0 %v2454_v31 }
0x1187   :  { %v940_v26 = vpop.f32.mrb[20].mxu0 }
0x1188   :  { %v947_v36 = vadd.f32 %v940_v26, %v2274_v51  ;;  %v942_v49 = vpop.f32.mrb[21].mxu0 }
0x1189   :  { %v943_v52 = vpop.f32.mrb[22].mxu0 }
0x118a   :  { %2023 = vtanh.f32 %v947_v36  ;;  %v944_v53 = vpop.f32.mrb[23].mxu0  ;;  %v1771_v57 = vmul.f32 -1.442695, %v947_v36 }
0x118b   :  { %v948_v54 = vadd.f32 %v944_v53, %v2253_v23 }
0x118d   :  { %2025 = vtanh.f32 %v948_v54  ;;  %v1772_v58 = vmul.f32 -1.442695, %v948_v54 }
0x118e   :  { %2027 = vpow2.f32 %v1771_v57 }
0x118f   :  { %2029 = vpow2.f32 %v1772_v58 }
0x1194   :  { %v2024_v55 = vpop.eup %2023 }
0x1195   :  { %967 = vrot.lane.b32.xlu1 %v2024_v55, %s2110_s0  ;;  %v2484_v55 = vld [vmem:[%s2612_s8] ss:$8 sps:$4 sm:$0xff]  }
0x1197   :  { %v2026_v56 = vpop.eup %2025 }
0x1198   :  { %969 = vrot.lane.b32.xlu0 %v2026_v56, %s2110_s0  ;;  %v2028_v59 = vpop.eup %2027 }
0x1199   :  { %v2030_v60 = vpop.eup %2029  ;;  %v955_v51 = vadd.f32 1.0, %v2028_v59 }
0x119a   :  { %v956_v61 = vadd.f32 1.0, %v2030_v60  ;;  %v2490_v60 = vld [vmem:[%s2612_s8 + $0x14] ss:$8 sps:$4 sm:$0xff]  }
0x119b   :  { %2031 = vrcp.f32 %v955_v51 }
0x119c   :  { %2033 = vrcp.f32 %v956_v61  ;;  %v2498_v61 = vld [vmem:[%s2612_s8 + $0x10] ss:$8 sps:$4 sm:$0xff]  }
0x11a5   :  { %v2387_v62 = vpop.eup %2031 }
0x11a6   :  { %v2390_v6 = vpop.eup %2033  ;;  %v963_v40 = vmul.f32 %v2387_v62, %v873_v33 }
0x11a7   :  { %v964_v13 = vmul.f32 %v2390_v6, %v874_v39 }
0x1207   :  { %v968_v23 = vpop.permute.xlu1 %967 }
0x1208   :  { %v973_v63 = vmul.f32 %v2387_v62, %v968_v23 }
0x120a   :  { %977 = vrot.lane.b32.xlu1 %v973_v63, %s2111_s3  ;;  %v970_v9 = vpop.permute.xlu0 %969  ;;  %v2112_v63 = vmov 0.0  }
0x120b   :  { %v974_v10 = vmul.f32 %v2390_v6, %v970_v9 }
0x120d   :  { %979 = vrot.lane.b32.xlu0 %v974_v10, %s2111_s3 }
0x127c   :  { %v978_v11 = vpop.permute.xlu1 %977 }
0x127d   :  { %v983_v12 = vadd.f32 %v978_v11, %v963_v40 }
0x127f   :  { %2035 = vtanh.f32 %v983_v12  ;;  %v980_v14 = vpop.permute.xlu0 %979 }
0x1280   :  { %v984_v15 = vadd.f32 %v980_v14, %v964_v13 }
0x1282   :  { %2037 = vtanh.f32 %v984_v15  ;;  %v1784_v15 = vld [vmem:[%s2614_s7] ss:$0 sm:$0xff] }
0x1289   :  { %v2036_v16 = vpop.eup %2035 }
0x128a   :  { %989 = vrot.lane.b32.xlu1 %v2036_v16, %s2110_s0 }
0x128c   :  { %v2038_v17 = vpop.eup %2037 }
0x128d   :  { %991 = vrot.lane.b32.xlu0 %v2038_v17, %s2110_s0 }
0x128e   :  { %451 = vrot.lane.b32.xlu1 %v1817_v18, %s2111_s3 }
0x1291   :  { %339 = vrot.lane.b32.xlu0 %v1815_v19, %s2111_s3 }
0x1292   :  { %671 = vrot.lane.b32.xlu1 %v1821_v3, %s2111_s3 }
0x1295   :  { %561 = vrot.lane.b32.xlu0 %v1819_v47, %s2111_s3 }
0x1296   :  { %787 = vrot.lane.b32.xlu1 %v1824_v2, %s2110_s0 }
0x1299   :  { %897 = vrot.lane.b32.xlu0 %v1826_v20, %s2110_s0 }
0x129a   :  { %346 = vrot.lane.b32.xlu1 %v1816_v21, %s2110_s0 }
0x129d   :  { %677 = vrot.lane.b32.xlu0 %v1822_v25, %s2110_s0 }
0x12a1   :  { %567 = vrot.lane.b32.xlu0 %v1820_v22, %s2110_s0 }
0x12a5   :  { %457 = vrot.lane.b32.xlu0 %v1818_v27, %s2110_s0 }
0x12a9   :  { %891 = vrot.lane.b32.xlu0 %v1825_v34, %s2111_s3 }
0x12fc   :  { %v990_v45 = vpop.permute.xlu1 %989 }
0x12fd   :  { %v995_v7 = vmul.f32 %v2387_v62, %v990_v45 }
0x12ff   :  { %v992_v29 = vpop.permute.xlu0 %991  ;;  %v1827_v43 = vpack.c.bf16 %v995_v7, %v995_v7 }
0x1300   :  { %v996_v32 = vmul.f32 %v2390_v6, %v992_v29  ;;  %v452_v33 = vpop.permute.xlu1 %451  ;;  %v1775_v6 = vld [vmem:[%s2613_s6] ss:$0 sm:$0xff] }
0x1301   :  { %454 = vst.msk [vmem:[#allocation2 + $0x4] sm:$0xf] %vm342_vm1, %v452_v33 }
0x1302   :  { %v1828_v35 = vpack.c.bf16 %v996_v32, %v996_v32 }
0x1303   :  { %v340_v39 = vpop.permute.xlu0 %339 }
0x1304   :  { %343 = vst.msk [vmem:[#allocation2] sm:$0xf] %vm342_vm1, %v340_v39  ;;  %v672_v4 = vpop.permute.xlu1 %671  ;;  %1007 = vrot.lane.b32.xlu1 %v1828_v35, %s2110_s0 }
0x1305   :  { %674 = vst.msk [vmem:[#allocation2 + $0xc] sm:$0xf] %vm342_vm1, %v672_v4 }
0x1307   :  { %v562_v8 = vpop.permute.xlu0 %561 }
0x1308   :  { %564 = vst.msk [vmem:[#allocation2 + $0x8] sm:$0xf] %vm342_vm1, %v562_v8  ;;  %v788_v42 = vpop.permute.xlu1 %787  ;;  %781 = vrot.lane.b32.xlu1 %v1823_v41, %s2111_s3 }
0x1309   :  { %790 = vst.msk [vmem:[#allocation2 + $0x8] sm:$0xf] %vm349_vm2, %v788_v42 }
0x130b   :  { %v898_v44 = vpop.permute.xlu0 %897 }
0x130c   :  { %900 = vst.msk [vmem:[#allocation2 + $0x4] sm:$0xf] %vm349_vm2, %v898_v44  ;;  %v347_v46 = vpop.permute.xlu1 %346  ;;  %1001 = vrot.lane.b32.xlu1 %v1827_v43, %s2111_s3 }
0x130d   :  { %350 = vst.msk [vmem:[#allocation2 + $0x18] sm:$0xf] %vm349_vm2, %v347_v46 }
0x130f   :  { %v678_v0 = vpop.permute.xlu0 %677 }
0x1310   :  { %680 = vst.msk [vmem:[#allocation2 + $0xc] sm:$0xf] %vm349_vm2, %v678_v0  ;;  %v1013_v58 = vld [vmem:[#allocation2 + $0x8] sm:$0xf] }
0x1313   :  { %v568_v26 = vpop.permute.xlu0 %567 }
0x1314   :  { %570 = vst.msk [vmem:[#allocation2 + $0x10] sm:$0xf] %vm349_vm2, %v568_v26 }
0x1317   :  { %v458_v36 = vpop.permute.xlu0 %457  ;;  %v1014_v54 = vld [vmem:[#allocation2 + $0xc] sm:$0xf] }
0x1318   :  { %460 = vst.msk [vmem:[#allocation2 + $0x14] sm:$0xf] %vm349_vm2, %v458_v36  ;;  %v1777_v59 = vcombine.low %v1013_v58, %v1014_v54 }
0x131b   :  { %v892_v49 = vpop.permute.xlu0 %891 }
0x131c   :  { %894 = vst.msk [vmem:[#allocation2 + $0x14] sm:$0xf] %vm342_vm1, %v892_v49 }
0x1376   :  { %v1008_v52 = vpop.permute.xlu1 %1007 }
0x1377   :  { %1010 = vst.msk [vmem:[#allocation2] sm:$0xf] %vm349_vm2, %v1008_v52 }
0x137a   :  { %v782_v53 = vpop.permute.xlu1 %781 }
0x137b   :  { %784 = vst.msk [vmem:[#allocation2 + $0x10] sm:$0xf] %vm342_vm1, %v782_v53 }
0x137e   :  { %v1002_v56 = vpop.permute.xlu1 %1001  ;;  %v1911_v57 = vld [vmem:[#allocation2] sm:$0xff]  }
0x137f   :  { %1004 = vst.msk [vmem:[#allocation2 + $0x18] sm:$0xf] %vm342_vm1, %v1002_v56  ;;  %1854 = vmatprep.mubr.msk.bf16.mxu1 %vm1058_vm3, %v1911_v57 }
0x1380   :  { %1855 = vmatmul.mubr.msk.bf16.vlgmr.msra.gmra.mrb[20].mxu1 %vm1058_vm3, %v1777_v59 }
0x1381   :  { %1228 = vmatpush1.bf16.msra.mxu1 %v2484_v55  ;;  %1259 = vmatprep.mubr.bf16.mxu1 %v2109_v1 }
0x1382   :  { %v1015_v51 = vld [vmem:[#allocation2 + $0x10] sm:$0xf]  ;;  %1229 = vmatprep.subr.bf16.mxu1 %v2490_v60 }
0x1383   :  { %v1785_v62 = vcombine.low %v1014_v54, %v1015_v51 }
0x1385   :  { %1866 = vmatprep.mubr.msk.bf16.mxu0 %vm1058_vm3, %v1785_v62  ;;  %1230 = vmatpush1.bf16.msra.mxu1 %v2498_v61 }
0x1386   :  { %v1922_v23 = vld [vmem:[#allocation2 + $0x14] sm:$0xff]   ;;  %1429 = vmatprep.subr.bf16.mxu1 %v2454_v31 }
0x1387   :  { %1867 = vmatmul.mubr.msk.bf16.vlgmr.msra.gmra.mrb[24].mxu0 %vm1058_vm3, %v1922_v23 }
0x1388   :  { %1260 = vmatmul.mubr.bf16.vlgmr.msra.gmra.mrb[24].mxu1 %v2109_v1  ;;  %1331 = vmatpush1.bf16.msra.mxu0 %v2484_v55 }
0x1389   :  { %1332 = vmatprep.subr.bf16.mxu0 %v2490_v60  ;;  %1362 = vmatprep.mubr.bf16.mxu0 %v2109_v1 }
0x138a   :  { %1430 = vmatpush1.bf16.msra.mxu1 %v2484_v55  ;;  %1461 = vmatprep.mubr.bf16.mxu1 %v2109_v1 }
0x138b   :  { %1431 = vmatprep.subr.bf16.mxu1 %v2490_v60 }
0x138c   :  { %1333 = vmatpush1.bf16.msra.mxu0 %v2498_v61 }
0x138d   :  { %1528 = vmatprep.subr.bf16.mxu0 %v2454_v31 }
0x138e   :  { %1432 = vmatpush1.bf16.msra.mxu1 %v2498_v61 }
0x138f   :  { %1870 = vmatprep.subr.bf16.mxu1 %v2112_v63 }
0x1453   :  { %v1856_v9 = vpop.f32.mrb[20].mxu1 }
0x1454   :  { %v2520_v10 = vadd.f32 %v1856_v9, %v1775_v6  ;;  %v1099_v40 = vpop.f32.mrb[21].mxu1 }
0x1455   :  { %v1857_v11 = vpop.f32.mrb[22].mxu1  ;;  %v1100_v16 = vadd.f32 %v1775_v6, %v1099_v40 }
0x1456   :  { %v2522_v12 = vadd.f32 %v1857_v11, %v1775_v6  ;;  %v1102_v13 = vpop.f32.mrb[23].mxu1 }
0x1457   :  { %v2524_v14 = vadd.f32 %v1775_v6, %v1102_v13 }
0x145a   :  { %v1868_v17 = vpop.f32.mrb[24].mxu0 }
0x145b   :  { %v2529_v18 = vadd.f32 %v1868_v17, %v1784_v15  ;;  %v1192_v19 = vpop.f32.mrb[25].mxu0  ;;  %v1261_v3 = vpop.f32.mrb[24].mxu1 }
0x145c   :  { %v2531_v47 = vadd.f32 %v1784_v15, %v1192_v19  ;;  %v1268_v2 = vadd.f32 %v1261_v3, %v1100_v16  ;;  %v1869_v20 = vpop.f32.mrb[26].mxu0  ;;  %v1263_v21 = vpop.f32.mrb[25].mxu1 }
0x145d   :  { %v1204_v25 = vadd.f32 %v1869_v20, %v1784_v15  ;;  %v1195_v48 = vpop.f32.mrb[27].mxu0  ;;  %v1264_v38 = vpop.f32.mrb[26].mxu1 }
0x145e   :  { %2039 = vtanh.f32 %v1268_v2  ;;  %v2533_v22 = vadd.f32 %v1784_v15, %v1195_v48  ;;  %v1265_v27 = vpop.f32.mrb[27].mxu1  ;;  %v1797_v5 = vmul.f32 -1.442695, %v1268_v2 }
0x145f   :  { %v1269_v34 = vadd.f32 %v1265_v27, %v1204_v25 }
0x1461   :  { %2041 = vtanh.f32 %v1269_v34  ;;  %v1798_v30 = vmul.f32 -1.442695, %v1269_v34 }
0x1462   :  { %2043 = vpow2.f32 %v1797_v5 }
0x1463   :  { %2045 = vpow2.f32 %v1798_v30 }
0x1468   :  { %v2040_v50 = vpop.eup %2039 }
0x1469   :  { %1292 = vrot.lane.b32.xlu0 %v2040_v50, %s2110_s0 }
0x146b   :  { %v2042_v24 = vpop.eup %2041 }
0x146c   :  { %1294 = vrot.lane.b32.xlu1 %v2042_v24, %s2110_s0  ;;  %v2044_v45 = vpop.eup %2043 }
0x146d   :  { %1285 = vrot.lane.b32.xlu0 %v2112_v63, %s2111_s3  ;;  %v2046_v28 = vpop.eup %2045  ;;  %v1276_v29 = vadd.f32 1.0, %v2044_v45 }
0x146e   :  { %v1277_v31 = vadd.f32 1.0, %v2046_v28 }
0x146f   :  { %2047 = vrcp.f32 %v1276_v29 }
0x1470   :  { %2049 = vrcp.f32 %v1277_v31 }
0x1479   :  { %v2048_v32 = vpop.eup %2047 }
0x147a   :  { %v2050_v37 = vpop.eup %2049 }
0x14db   :  { %v1293_v33 = vpop.permute.xlu0 %1292 }
0x14dc   :  { %v1298_v35 = vmul.f32 %v2048_v32, %v1293_v33 }
0x14de   :  { %v1295_v39 = vpop.permute.xlu1 %1294  ;;  %1302 = vrot.lane.b32.xlu1 %v1298_v35, %s2111_s3 }
0x14df   :  { %v1299_v4 = vmul.f32 %v2050_v37, %v1295_v39  ;;  %v1286_v41 = vpop.permute.xlu0 %1285 }
0x14e0   :  { %v1288_v7 = vmul.f32 %v2048_v32, %v1286_v41  ;;  %v1289_v43 = vmul.f32 %v2050_v37, %v1286_v41 }
0x14e1   :  { %1304 = vrot.lane.b32.xlu0 %v1299_v4, %s2111_s3 }
0x1550   :  { %v1303_v8 = vpop.permute.xlu1 %1302 }
0x1551   :  { %v1308_v42 = vadd.f32 %v1303_v8, %v1288_v7 }
0x1553   :  { %2051 = vtanh.f32 %v1308_v42  ;;  %v1305_v44 = vpop.permute.xlu0 %1304 }
0x1554   :  { %v1309_v46 = vadd.f32 %v1305_v44, %v1289_v43 }
0x1556   :  { %2053 = vtanh.f32 %v1309_v46 }
0x155d   :  { %v2052_v0 = vpop.eup %2051 }
0x155e   :  { %1314 = vrot.lane.b32.xlu1 %v2052_v0, %s2110_s0 }
0x1560   :  { %v2054_v26 = vpop.eup %2053 }
0x1561   :  { %1316 = vrot.lane.b32.xlu0 %v2054_v26, %s2110_s0 }
0x15d0   :  { %v1315_v36 = vpop.permute.xlu1 %1314 }
0x15d1   :  { %v1320_v52 = vmul.f32 %v2048_v32, %v1315_v36 }
0x15d3   :  { %v1317_v49 = vpop.permute.xlu0 %1316 }
0x15d4   :  { %v1321_v53 = vmul.f32 %v2050_v37, %v1317_v49 }
0x15d6   :  { %v1322_v54 = vpack.c.bf16 %v1321_v53, %v1320_v52 }
0x15d8   :  { %1325 = vrot.lane.b32.xlu1 %v1322_v54, %s2111_s3 }
0x164a   :  { %v1326_v56 = vpop.permute.xlu1 %1325 }
0x164b   :  { %1799 = vmatmul.mubr.msk.bf16.vlgmr.msra.gmra.mrb[28].mxu0 %vm137_vm0, %v1326_v56 }
0x164c   :  { %1529 = vmatpush1.bf16.msra.mxu0 %v2484_v55  ;;  %1560 = vmatprep.mubr.bf16.mxu0 %v2109_v1 }
0x164d   :  { %1530 = vmatprep.subr.bf16.mxu0 %v2490_v60 }
0x1650   :  { %1531 = vmatpush1.bf16.msra.mxu0 %v2498_v61 }
0x171e   :  { %v1364_v57 = vpop.f32.mrb[28].mxu0 }
0x171f   :  { %v1371_v58 = vadd.f32 %v1364_v57, %v2524_v14  ;;  %v1366_v59 = vpop.f32.mrb[29].mxu0 }
0x1720   :  { %v1367_v51 = vpop.f32.mrb[30].mxu0 }
0x1721   :  { %2055 = vtanh.f32 %v1371_v58  ;;  %v1368_v62 = vpop.f32.mrb[31].mxu0  ;;  %v1800_v1 = vmul.f32 -1.442695, %v1371_v58 }
0x1722   :  { %v1372_v23 = vadd.f32 %v1368_v62, %v2529_v18 }
0x1724   :  { %2057 = vtanh.f32 %v1372_v23  ;;  %v1801_v60 = vmul.f32 -1.442695, %v1372_v23 }
0x1725   :  { %2059 = vpow2.f32 %v1800_v1 }
0x1726   :  { %2061 = vpow2.f32 %v1801_v60 }
0x172b   :  { %v2056_v6 = vpop.eup %2055 }
0x172c   :  { %1391 = vrot.lane.b32.xlu0 %v2056_v6, %s2110_s0 }
0x172e   :  { %v2058_v55 = vpop.eup %2057 }
0x172f   :  { %1393 = vrot.lane.b32.xlu1 %v2058_v55, %s2110_s0  ;;  %v2060_v61 = vpop.eup %2059 }
0x1730   :  { %v2062_v9 = vpop.eup %2061  ;;  %v1379_v40 = vadd.f32 1.0, %v2060_v61 }
0x1731   :  { %v1380_v11 = vadd.f32 1.0, %v2062_v9 }
0x1732   :  { %2063 = vrcp.f32 %v1379_v40 }
0x1733   :  { %2065 = vrcp.f32 %v1380_v11 }
0x173c   :  { %v2064_v13 = vpop.eup %2063 }
0x173d   :  { %v2066_v16 = vpop.eup %2065  ;;  %v1387_v19 = vmul.f32 %v2064_v13, %v1308_v42 }
0x173e   :  { %v1388_v20 = vmul.f32 %v2066_v16, %v1309_v46 }
0x179e   :  { %v1392_v14 = vpop.permute.xlu0 %1391 }
0x179f   :  { %v1397_v15 = vmul.f32 %v2064_v13, %v1392_v14 }
0x17a1   :  { %1401 = vrot.lane.b32.xlu0 %v1397_v15, %s2111_s3  ;;  %v1394_v17 = vpop.permute.xlu1 %1393 }
0x17a2   :  { %v1398_v18 = vmul.f32 %v2066_v16, %v1394_v17 }
0x17a4   :  { %1403 = vrot.lane.b32.xlu1 %v1398_v18, %s2111_s3 }
0x1813   :  { %v1402_v3 = vpop.permute.xlu0 %1401 }
0x1814   :  { %v1407_v2 = vadd.f32 %v1402_v3, %v1387_v19 }
0x1816   :  { %2067 = vtanh.f32 %v1407_v2  ;;  %v1404_v21 = vpop.permute.xlu1 %1403 }
0x1817   :  { %v1408_v25 = vadd.f32 %v1404_v21, %v1388_v20 }
0x1819   :  { %2069 = vtanh.f32 %v1408_v25 }
0x1820   :  { %v2068_v48 = vpop.eup %2067 }
0x1821   :  { %1413 = vrot.lane.b32.xlu0 %v2068_v48, %s2110_s0 }
0x1823   :  { %v2070_v38 = vpop.eup %2069 }
0x1824   :  { %1415 = vrot.lane.b32.xlu1 %v2070_v38, %s2110_s0 }
0x1893   :  { %v1414_v27 = vpop.permute.xlu0 %1413 }
0x1894   :  { %v1419_v50 = vmul.f32 %v2064_v13, %v1414_v27 }
0x1896   :  { %v1416_v34 = vpop.permute.xlu1 %1415 }
0x1897   :  { %v1420_v24 = vmul.f32 %v2066_v16, %v1416_v34 }
0x1899   :  { %v1421_v5 = vpack.c.bf16 %v1420_v24, %v1419_v50  ;;  %v1923_v24 = vld [vmem:[%s2615_s9] sm:$0xff]  }
0x189b   :  { %1424 = vrot.lane.b32.xlu0 %v1421_v5, %s2111_s3 }
0x190d   :  { %v1425_v30 = vpop.permute.xlu0 %1424 }
0x190e   :  { %1802 = vmatmul.mubr.msk.bf16.vlgmr.msra.gmra.mrb[28].mxu1 %vm137_vm0, %v1425_v30  ;;  %v1924_v30 = vld [vmem:[%s2615_s9 + $0x8] sm:$0xff]  }
0x190f   :  { %1871 = vmatpush3.bf16.msra.mxu1 %v1923_v24  ;;  %1878 = vmatprep.mubr.msk.bf16.mxu1 %vm2113_vm4, %v2112_v63 }
0x1910   :  { %1872 = vmatprep.subr.bf16.mxu1 %v2112_v63 }
0x1913   :  { %1873 = vmatpush3.bf16.msra.mxu1 %v1924_v30 }
0x1914   :  { %1874 = vmatprep.subr.bf16.mxu1 %v2112_v63 }
0x19e1   :  { %v1463_v45 = vpop.f32.mrb[28].mxu1 }
0x19e2   :  { %v1470_v28 = vadd.f32 %v1463_v45, %v2520_v10  ;;  %v1465_v29 = vpop.f32.mrb[29].mxu1 }
0x19e3   :  { %v1466_v31 = vpop.f32.mrb[30].mxu1  ;;  %v1926_v29 = vld [vmem:[%s2615_s9 + $0x18] sm:$0xff]  }
0x19e4   :  { %2071 = vtanh.f32 %v1470_v28  ;;  %v1467_v32 = vpop.f32.mrb[31].mxu1  ;;  %v1803_v39 = vmul.f32 -1.442695, %v1470_v28  ;;  %v1925_v28 = vld [vmem:[%s2615_s9 + $0x10] sm:$0xff]  }
0x19e5   :  { %v1471_v33 = vadd.f32 %v1467_v32, %v2533_v22  ;;  %1875 = vmatpush3.bf16.msra.mxu1 %v1925_v28 }
0x19e6   :  { %1876 = vmatprep.subr.bf16.mxu1 %v2112_v63  ;;  %v1808_v63 = vld [vmem:[%s2616_s10] ss:$0 sm:$0xff] }
0x19e7   :  { %2073 = vtanh.f32 %v1471_v33  ;;  %v1804_v4 = vmul.f32 -1.442695, %v1471_v33 }
0x19e8   :  { %2075 = vpow2.f32 %v1803_v39 }
0x19e9   :  { %2077 = vpow2.f32 %v1804_v4  ;;  %1877 = vmatpush3.bf16.msra.mxu1 %v1926_v29 }
0x19ee   :  { %v2072_v35 = vpop.eup %2071 }
0x19ef   :  { %1490 = vrot.lane.b32.xlu1 %v2072_v35, %s2110_s0 }
0x19f1   :  { %v2074_v37 = vpop.eup %2073 }
0x19f2   :  { %1492 = vrot.lane.b32.xlu0 %v2074_v37, %s2110_s0  ;;  %v2076_v41 = vpop.eup %2075 }
0x19f3   :  { %v2078_v7 = vpop.eup %2077  ;;  %v1478_v10 = vadd.f32 1.0, %v2076_v41 }
0x19f4   :  { %v1479_v8 = vadd.f32 1.0, %v2078_v7 }
0x19f5   :  { %2079 = vrcp.f32 %v1478_v10  ;;  %v2114_v10 = vmov 3  }
0x19f6   :  { %2081 = vrcp.f32 %v1479_v8  ;;  %1888 = vset.pattern.permute.xlu0 %v2114_v10 }
0x19ff   :  { %v2080_v42 = vpop.eup %2079 }
0x1a00   :  { %v2082_v44 = vpop.eup %2081  ;;  %v1486_v26 = vmul.f32 %v2080_v42, %v1407_v2 }
0x1a01   :  { %v1487_v52 = vmul.f32 %v2082_v44, %v1408_v25 }
0x1a61   :  { %v1491_v43 = vpop.permute.xlu1 %1490 }
0x1a62   :  { %v1496_v22 = vmul.f32 %v2080_v42, %v1491_v43 }
0x1a64   :  { %1500 = vrot.lane.b32.xlu1 %v1496_v22, %s2111_s3  ;;  %v1493_v46 = vpop.permute.xlu0 %1492 }
0x1a65   :  { %v1497_v0 = vmul.f32 %v2082_v44, %v1493_v46 }
0x1a67   :  { %1502 = vrot.lane.b32.xlu0 %v1497_v0, %s2111_s3 }
0x1ad6   :  { %v1501_v36 = vpop.permute.xlu1 %1500 }
0x1ad7   :  { %v1506_v49 = vadd.f32 %v1501_v36, %v1486_v26 }
0x1ad9   :  { %2083 = vtanh.f32 %v1506_v49  ;;  %v1503_v53 = vpop.permute.xlu0 %1502 }
0x1ada   :  { %v1507_v54 = vadd.f32 %v1503_v53, %v1487_v52 }
0x1adc   :  { %2085 = vtanh.f32 %v1507_v54 }
0x1ae3   :  { %v2084_v56 = vpop.eup %2083 }
0x1ae4   :  { %1512 = vrot.lane.b32.xlu1 %v2084_v56, %s2110_s0 }
0x1ae6   :  { %v2086_v57 = vpop.eup %2085 }
0x1ae7   :  { %1514 = vrot.lane.b32.xlu0 %v2086_v57, %s2110_s0 }
0x1b56   :  { %v1513_v58 = vpop.permute.xlu1 %1512 }
0x1b57   :  { %v1518_v51 = vmul.f32 %v2080_v42, %v1513_v58 }
0x1b59   :  { %v1515_v59 = vpop.permute.xlu0 %1514 }
0x1b5a   :  { %v1519_v62 = vmul.f32 %v2082_v44, %v1515_v59 }
0x1b5c   :  { %v1520_v23 = vpack.c.bf16 %v1519_v62, %v1518_v51 }
0x1b5e   :  { %1523 = vrot.lane.b32.xlu1 %v1520_v23, %s2111_s3 }
0x1bd0   :  { %v1524_v6 = vpop.permute.xlu1 %1523 }
0x1bd1   :  { %1805 = vmatmul.mubr.msk.bf16.vlgmr.msra.gmra.mrb[32].mxu0 %vm137_vm0, %v1524_v6 }
0x1ca4   :  { %v1562_v55 = vpop.f32.mrb[32].mxu0 }
0x1ca5   :  { %v1569_v1 = vadd.f32 %v1562_v55, %v2522_v12  ;;  %v1564_v60 = vpop.f32.mrb[33].mxu0 }
0x1ca6   :  { %v1565_v61 = vpop.f32.mrb[34].mxu0 }
0x1ca7   :  { %2087 = vtanh.f32 %v1569_v1  ;;  %v1566_v9 = vpop.f32.mrb[35].mxu0  ;;  %v1806_v14 = vmul.f32 -1.442695, %v1569_v1 }
0x1ca8   :  { %v1570_v40 = vadd.f32 %v1566_v9, %v2531_v47 }
0x1caa   :  { %2089 = vtanh.f32 %v1570_v40  ;;  %v1807_v15 = vmul.f32 -1.442695, %v1570_v40 }
0x1cab   :  { %2091 = vpow2.f32 %v1806_v14 }
0x1cac   :  { %2093 = vpow2.f32 %v1807_v15 }
0x1cb1   :  { %v2088_v11 = vpop.eup %2087 }
0x1cb2   :  { %1589 = vrot.lane.b32.xlu0 %v2088_v11, %s2110_s0 }
0x1cb4   :  { %v2090_v13 = vpop.eup %2089 }
0x1cb5   :  { %1591 = vrot.lane.b32.xlu1 %v2090_v13, %s2110_s0  ;;  %v2092_v16 = vpop.eup %2091 }
0x1cb6   :  { %v2094_v17 = vpop.eup %2093  ;;  %v1577_v12 = vadd.f32 1.0, %v2092_v16 }
0x1cb7   :  { %v1578_v18 = vadd.f32 1.0, %v2094_v17 }
0x1cb8   :  { %2095 = vrcp.f32 %v1577_v12 }
0x1cb9   :  { %2097 = vrcp.f32 %v1578_v18 }
0x1cc2   :  { %v2096_v19 = vpop.eup %2095 }
0x1cc3   :  { %v2098_v2 = vpop.eup %2097  ;;  %v1585_v25 = vmul.f32 %v2096_v19, %v1506_v49 }
0x1cc4   :  { %v1586_v27 = vmul.f32 %v2098_v2, %v1507_v54 }
0x1d24   :  { %v1590_v3 = vpop.permute.xlu0 %1589 }
0x1d25   :  { %v1595_v47 = vmul.f32 %v2096_v19, %v1590_v3 }
0x1d27   :  { %1599 = vrot.lane.b32.xlu0 %v1595_v47, %s2111_s3  ;;  %v1592_v20 = vpop.permute.xlu1 %1591 }
0x1d28   :  { %v1596_v21 = vmul.f32 %v2098_v2, %v1592_v20 }
0x1d2a   :  { %1601 = vrot.lane.b32.xlu1 %v1596_v21, %s2111_s3 }
0x1d99   :  { %v1600_v48 = vpop.permute.xlu0 %1599 }
0x1d9a   :  { %v1605_v38 = vadd.f32 %v1600_v48, %v1585_v25 }
0x1d9c   :  { %2099 = vtanh.f32 %v1605_v38  ;;  %v1602_v34 = vpop.permute.xlu1 %1601 }
0x1d9d   :  { %v1606_v50 = vadd.f32 %v1602_v34, %v1586_v27 }
0x1d9f   :  { %2101 = vtanh.f32 %v1606_v50 }
0x1da6   :  { %v2100_v5 = vpop.eup %2099 }
0x1da7   :  { %1611 = vrot.lane.b32.xlu0 %v2100_v5, %s2110_s0 }
0x1da9   :  { %v2102_v45 = vpop.eup %2101 }
0x1daa   :  { %1613 = vrot.lane.b32.xlu1 %v2102_v45, %s2110_s0 }
0x1e19   :  { %v1612_v31 = vpop.permute.xlu0 %1611 }
0x1e1a   :  { %v1617_v33 = vmul.f32 %v2096_v19, %v1612_v31 }
0x1e1c   :  { %v1614_v32 = vpop.permute.xlu1 %1613 }
0x1e1d   :  { %v1618_v35 = vmul.f32 %v2098_v2, %v1614_v32 }
0x1e1f   :  { %v1619_v37 = vpack.c.bf16 %v1618_v35, %v1617_v33 }
0x1e21   :  { %1621 = vrot.lane.b32.xlu0 %v1619_v37, %s2111_s3  ;;  %v1623_v39 = vrot.slane %v1619_v37, 4 }
0x1e23   :  { %1624 = vrot.lane.b32.xlu1 %v1623_v39, %s2110_s0 }
0x1e93   :  { %v1622_v4 = vpop.permute.xlu0 %1621 }
0x1e95   :  { %v1625_v41 = vpop.permute.xlu1 %1624 }
0x1e96   :  { %v1628_v7 = vsel %vm137_vm0, %v1622_v4, %v1625_v41 }
0x1e97   :  { %1879 = vmatmul.mubr.msk.bf16.vlgmr.msra.gmra.mrb[32].mxu1 %vm1058_vm3, %v1628_v7 }
0x1f6a   :  { %v1695_v8 = vpop.f32.mrb[32].mxu1 }
0x1f6b   :  { %v1696_v42 = vadd.f32 %v1808_v63, %v1695_v8  ;;  %v1880_v43 = vpop.f32.mrb[33].mxu1 }
0x1f6c   :  { %v1698_v22 = vpop.f32.mrb[34].mxu1 }
0x1f6d   :  { %2103 = vtanh.f32 %v1696_v42  ;;  %v1814_v44 = vmul.f32 -1.442695, %v1696_v42  ;;  %v1881_v46 = vpop.f32.mrb[35].mxu1 }
0x1f6f   :  { %2105 = vpow2.f32 %v1814_v44 }
0x1f77   :  { %v2104_v0 = vpop.eup %2103 }
0x1f78   :  { %1703 = vst.msk [vmem:[%s2617_s11] sm:$0xff] %vm1702_vm5, %v2104_v0 }
0x1f79   :  { %v2106_v26 = vpop.eup %2105 }
0x1f7a   :  { %v1707_v36 = vadd.f32 1.0, %v2106_v26 }
0x1f7c   :  { %2107 = vrcp.f32 %v1707_v36 }
0x1f86   :  { %v2108_v49 = vpop.eup %2107 }
0x1f87   :  { %v1710_v52 = vmul.f32 3.1415927, %v2108_v49 }
0x1f89   :  { %1713 = vperm.xlu0 %1888, %v1710_v52  }
0x2008   :  { %v1714_v53 = vpop.permute.xlu0 %1713 }
0x2009   :  { %1716 = vst.msk [vmem:[%s2618_s12] sm:$0xff] %vm1702_vm5, %v1714_v53 }

</bundles_post_ra>
